<compile_context>
chip_gen: v6e
topology: v6e:2x2x1
jax: 0.10.0
libtpu: 0.0.40
codegen_flags: <defaults>
</compile_context>

<pallas_src>
import functools

import jax
import jax.numpy as jnp
from jax.experimental import pallas as pl
from jax.experimental.pallas import tpu as pltpu

EPS = float(jnp.finfo(jnp.float32).eps)  # nn.RMSNorm default eps=None -> finfo eps

# stacked-parameter order fed to the kernel (each has a leading layer dim L)
PACKED_ORDER = (
    "ln1", "ln2",            # (L, 1, C) f32
    "wqkv",                  # (L, C, 3C) bf16   (q columns pre-scaled by hs**-0.5)
    "wproj", "bproj",        # (L, H, hs, C) bf16, (L, 1, C) f32
    "wfi", "bfi",            # (L, C, 4C) bf16,   (L, 1, 4C) f32
    "w12", "b12",            # (L, 4C, 8C) bf16,  (L, 1, 8C) f32   (w1|w2 fused)
    "w3", "b3",              # (L, 4C, 4C) bf16,  (L, 1, 4C) f32
    "wfo", "bfo",            # (L, 4C, C) bf16,   (L, 1, C) f32
)


def encoder_kernel(x_ref, mask_ref,
                   ln1_ref, ln2_ref,
                   wqkv_ref, wproj_ref, bproj_ref,
                   wfi_ref, bfi_ref,
                   w12_ref, b12_ref,
                   w3_ref, b3_ref,
                   wfo_ref, bfo_ref,
                   o_ref, act_ref, *, num_heads, eps):
    layer = pl.program_id(0)
    last = pl.num_programs(0) - 1
    f32 = jnp.float32

    # Load the input activation once; it stays resident in VMEM across layers.
    @pl.when(layer == 0)
    def _load_input():
        act_ref[...] = x_ref[...].astype(f32)

    x = act_ref[...]                       # (B*T, C) f32
    bt, c = x.shape
    hs = c // num_heads
    inner = 4 * c

    def rmsnorm(v, w):
        ms = jnp.mean(v * v, axis=-1, keepdims=True)
        return v * jax.lax.rsqrt(ms + eps) * w

    def softmax_last(s):
        m = jnp.max(s, axis=-1, keepdims=True)
        e = jnp.exp(s - m)
        return e * pl.reciprocal(jnp.sum(e, axis=-1, keepdims=True), approx=True)

    # precomputed block-diagonal additive bias (0 same-sequence / -1e30 other),
    # DMA'd once and VMEM-resident for all layers
    mask = mask_ref[...]                   # (BT, BT) f32

    # ---------------- multi-head attention branch ----------------
    h = rmsnorm(x, ln1_ref[0])
    # fused q|k|v matmul; the q columns were pre-scaled by hs**-0.5 wrapper-side
    qkv = jnp.dot(h, wqkv_ref[0].astype(f32), preferred_element_type=f32)   # (BT, 3C)

    attn = jnp.zeros((bt, c), f32)
    for hd in range(num_heads):            # static unrolled loop (4 heads)
        q_h = qkv[:, hd * hs:(hd + 1) * hs]
        k_h = qkv[:, c + hd * hs:c + (hd + 1) * hs]
        v_h = qkv[:, 2 * c + hd * hs:2 * c + (hd + 1) * hs]
        s = jnp.dot(q_h, k_h.T, preferred_element_type=f32) + mask          # (BT, BT)
        p = softmax_last(s)
        o_h = jnp.dot(p, v_h, preferred_element_type=f32)                   # (BT, hs)
        # accumulate through the per-head slice of wproj -> no concat needed
        attn = attn + jnp.dot(o_h, wproj_ref[0, hd].astype(f32),
                              preferred_element_type=f32)
    x = x + attn + bproj_ref[0]                                             # residual 1

    # ---------------- feed-forward branch ----------------
    h2 = rmsnorm(x, ln2_ref[0])
    ff = jnp.dot(h2, wfi_ref[0].astype(f32), preferred_element_type=f32) + bfi_ref[0]
    x12 = jnp.dot(ff, w12_ref[0].astype(f32), preferred_element_type=f32) + b12_ref[0]
    x1 = x12[:, :inner]
    x2 = x12[:, inner:]
    hidden = (x1 * jax.nn.sigmoid(x1)) * x2                                 # SiLU(x1)*x2
    sw = jnp.dot(hidden, w3_ref[0].astype(f32), preferred_element_type=f32) + b3_ref[0]
    ffo = jnp.dot(sw, wfo_ref[0].astype(f32), preferred_element_type=f32) + bfo_ref[0]
    # TODO(synk): dropout layers are identity in eval mode; RNG masking not implemented.

    y = x + ffo                                                             # residual 2
    act_ref[...] = y                       # carry to the next layer (VMEM resident)

    @pl.when(layer == last)
    def _store_output():
        o_ref[...] = y.astype(o_ref.dtype)  # single HBM writeback at the end


def encoder_forward(x, packed, num_heads):
    B, T, C = x.shape
    BT = B * T
    L = packed["ln1"].shape[0]
    x2d = x.reshape(BT, C)                 # fold batch into rows

    # block-diagonal additive attention bias: a fused row attends only to rows
    # of its own sequence (decode=False -> no causal mask)
    seq_id = jnp.arange(BT, dtype=jnp.int32) // T
    mask = jnp.where(seq_id[:, None] == seq_id[None, :],
                     jnp.float32(0.0), jnp.float32(-1e30))

    plist = [packed[name] for name in PACKED_ORDER]

    in_specs = [pl.BlockSpec((BT, C), lambda l: (0, 0)),      # resident input
                pl.BlockSpec((BT, BT), lambda l: (0, 0))]     # resident attn bias
    for p in plist:
        nrest = p.ndim - 1
        in_specs.append(
            pl.BlockSpec((1,) + p.shape[1:], lambda l, n=nrest: (l,) + (0,) * n))

    out2d = pl.pallas_call(
        functools.partial(encoder_kernel, num_heads=num_heads, eps=EPS),
        out_shape=jax.ShapeDtypeStruct((BT, C), x.dtype),
        grid=(L,),
        in_specs=in_specs,
        out_specs=pl.BlockSpec((BT, C), lambda l: (0, 0)),
        scratch_shapes=[pltpu.VMEM((BT, C), jnp.float32)],
        compiler_params=pltpu.CompilerParams(
            dimension_semantics=("arbitrary",),   # layers are sequentially dependent
            vmem_limit_bytes=64 * 1024 * 1024,
        ),
    )(x2d, mask, *plist)
    return out2d.reshape(B, T, C)


# ------------------------- parameter initialization -------------------------
def init_block_params(key, C):
    H = 4 * C
    ks = jax.random.split(key, 20)

    def lin_w(k, fi, fo):
        return (jax.random.normal(k, (fi, fo), jnp.float32) / jnp.sqrt(fi)).astype(jnp.float32)

    def lin_b(k, fo):
        return (jax.random.normal(k, (1, fo), jnp.float32) * 0.01).astype(jnp.float32)

    return {
        "ln1": jnp.ones((1, C), jnp.float32),
        "ln2": jnp.ones((1, C), jnp.float32),
        "wq": lin_w(ks[0], C, C),
        "wk": lin_w(ks[1], C, C),
        "wv": lin_w(ks[2], C, C),
        "wproj": lin_w(ks[3], C, C), "bproj": lin_b(ks[4], C),
        "wfi": lin_w(ks[5], C, H), "bfi": lin_b(ks[6], H),
        "w1": lin_w(ks[7], H, H), "b1": lin_b(ks[8], H),
        "w2": lin_w(ks[9], H, H), "b2": lin_b(ks[10], H),
        "w3": lin_w(ks[11], H, H), "b3": lin_b(ks[12], H),
        "wfo": lin_w(ks[13], H, C), "bfo": lin_b(ks[14], C),
    }


def pack_encoder_params(all_params, num_heads):
    """Stack per-layer params with a leading layer dim, fuse q|k|v and w1|w2,
    pre-split wproj per head, fold the 1/sqrt(hs) score scale into wq, and cast
    matmul weights to bf16 (biases / RMSNorm weights stay f32)."""
    C = all_params[0]["wq"].shape[0]
    hs = C // num_heads
    scale = hs ** (-0.5)
    bf16 = jnp.bfloat16

    def stack(fn):
        return jnp.stack([fn(p) for p in all_params], axis=0)

    return {
        "ln1": stack(lambda p: p["ln1"]),
        "ln2": stack(lambda p: p["ln2"]),
        "wqkv": stack(lambda p: jnp.concatenate(
            [p["wq"] * scale, p["wk"], p["wv"]], axis=1)).astype(bf16),
        "wproj": stack(lambda p: p["wproj"].reshape(num_heads, hs, C)).astype(bf16),
        "bproj": stack(lambda p: p["bproj"]),
        "wfi": stack(lambda p: p["wfi"]).astype(bf16),
        "bfi": stack(lambda p: p["bfi"]),
        "w12": stack(lambda p: jnp.concatenate([p["w1"], p["w2"]], axis=1)).astype(bf16),
        "b12": stack(lambda p: jnp.concatenate([p["b1"], p["b2"]], axis=1)),
        "w3": stack(lambda p: p["w3"]).astype(bf16),
        "b3": stack(lambda p: p["b3"]),
        "wfo": stack(lambda p: p["wfo"]).astype(bf16),
        "bfo": stack(lambda p: p["bfo"]),
    }


# ------------------------------ pure-JAX reference ---------------------------
def encoder_ref(x, packed, num_heads):
    """Eval-mode reference on the same (bf16-stored) parameters, f32 math,
    standard per-batch attention (validates the fused-row block-diag mask)."""
    f32 = jnp.float32
    L = packed["ln1"].shape[0]
    C = x.shape[-1]
    hs = C // num_heads

    def rms(v, w):
        return v * jax.lax.rsqrt(jnp.mean(v * v, -1, keepdims=True) + EPS) * w

    for l in range(L):
        wqkv = packed["wqkv"][l].astype(f32)
        wproj = packed["wproj"][l].astype(f32)
        wfi = packed["wfi"][l].astype(f32)
        w12 = packed["w12"][l].astype(f32)
        w3 = packed["w3"][l].astype(f32)
        wfo = packed["wfo"][l].astype(f32)

        h = rms(x, packed["ln1"][l])
        qkv = h @ wqkv                              # q already scaled by hs**-0.5
        q, k, v = qkv[..., :C], qkv[..., C:2 * C], qkv[..., 2 * C:]
        attn = jnp.zeros_like(x)
        for hd in range(num_heads):
            sl = slice(hd * hs, (hd + 1) * hs)
            ww = jnp.einsum("btd,bsd->bts", q[..., sl], k[..., sl])
            ww = jax.nn.softmax(ww, axis=-1)
            o_h = jnp.einsum("bts,bsd->btd", ww, v[..., sl])
            attn = attn + o_h @ wproj[hd]
        x = x + attn + packed["bproj"][l]

        h2 = rms(x, packed["ln2"][l])
        ff = h2 @ wfi + packed["bfi"][l]
        x12 = ff @ w12 + packed["b12"][l]
        x1, x2 = x12[..., :4 * C], x12[..., 4 * C:]
        hidden = jax.nn.silu(x1) * x2
        x = x + (hidden @ w3 + packed["b3"][l]) @ wfo + packed["bfo"][l]
    return x


if __name__ == "__main__":
    # cfg: embedding_size=32, num_heads=4, block_size=8, dropout=0.1, 6 blocks
    B, T, C, NUM_HEADS, NUM_LAYERS = 2, 8, 32, 4, 6

    key = jax.random.PRNGKey(0)
    kx, kp = jax.random.split(key)
    x = jax.random.normal(kx, (B, T, C), jnp.float32)

    block_keys = jax.random.split(kp, NUM_LAYERS)
    raw_params = [init_block_params(block_keys[i], C) for i in range(NUM_LAYERS)]
    packed = pack_encoder_params(raw_params, NUM_HEADS)

    out = jax.block_until_ready(encoder_forward(x, packed, NUM_HEADS))

    ref = encoder_ref(x, packed, NUM_HEADS)
    assert out.shape == (B, T, C)
    # tolerance loosened for the EUP approx-reciprocal softmax denominator
    assert jnp.allclose(out, ref, atol=2e-2, rtol=2e-2), "mismatch vs reference"

    print("KERNEL_OK")
</pallas_src>

<mosaic_0001>
module attributes {stable_mosaic.version = 11 : i64} {
  func.func @encoder_kernel(%arg0: i32, %arg1: memref<16x32xf32, #tpu.memory_space<vmem>>, %arg2: memref<16x16xf32, #tpu.memory_space<vmem>>, %arg3: memref<1x1x32xf32, #tpu.memory_space<vmem>>, %arg4: memref<1x1x32xf32, #tpu.memory_space<vmem>>, %arg5: memref<1x32x96xbf16, #tpu.memory_space<vmem>>, %arg6: memref<1x4x8x32xbf16, #tpu.memory_space<vmem>>, %arg7: memref<1x1x32xf32, #tpu.memory_space<vmem>>, %arg8: memref<1x32x128xbf16, #tpu.memory_space<vmem>>, %arg9: memref<1x1x128xf32, #tpu.memory_space<vmem>>, %arg10: memref<1x128x256xbf16, #tpu.memory_space<vmem>>, %arg11: memref<1x1x256xf32, #tpu.memory_space<vmem>>, %arg12: memref<1x128x128xbf16, #tpu.memory_space<vmem>>, %arg13: memref<1x1x128xf32, #tpu.memory_space<vmem>>, %arg14: memref<1x128x32xbf16, #tpu.memory_space<vmem>>, %arg15: memref<1x1x32xf32, #tpu.memory_space<vmem>>, %arg16: memref<16x32xf32, #tpu.memory_space<vmem>>, %arg17: memref<16x32xf32, #tpu.memory_space<vmem>>) attributes {dimension_semantics = [#tpu.dimension_semantics<arbitrary>], iteration_bounds = array<i64: 6>, scalar_prefetch = 0 : i64, scratch_operands = 1 : i64, tpu.core_type = #tpu.core_type<tc>, window_params = [{pipeline_mode = #tpu.pipeline_mode<synchronous>, transform_indices = @transform_0, window_bounds = array<i64: 16, 32>}, {pipeline_mode = #tpu.pipeline_mode<synchronous>, transform_indices = @transform_1, window_bounds = array<i64: 16, 16>}, {transform_indices = @transform_2, window_bounds = array<i64: 1, 1, 32>}, {transform_indices = @transform_3, window_bounds = array<i64: 1, 1, 32>}, {transform_indices = @transform_4, window_bounds = array<i64: 1, 32, 96>}, {transform_indices = @transform_5, window_bounds = array<i64: 1, 4, 8, 32>}, {transform_indices = @transform_6, window_bounds = array<i64: 1, 1, 32>}, {transform_indices = @transform_7, window_bounds = array<i64: 1, 32, 128>}, {transform_indices = @transform_8, window_bounds = array<i64: 1, 1, 128>}, {transform_indices = @transform_9, window_bounds = array<i64: 1, 128, 256>}, {transform_indices = @transform_10, window_bounds = array<i64: 1, 1, 256>}, {transform_indices = @transform_11, window_bounds = array<i64: 1, 128, 128>}, {transform_indices = @transform_12, window_bounds = array<i64: 1, 1, 128>}, {transform_indices = @transform_13, window_bounds = array<i64: 1, 128, 32>}, {transform_indices = @transform_14, window_bounds = array<i64: 1, 1, 32>}, {pipeline_mode = #tpu.pipeline_mode<synchronous>, transform_indices = @transform_15, window_bounds = array<i64: 16, 32>}]} {
    %c0_i32 = arith.constant 0 : i32
    %0 = arith.cmpi eq, %arg0, %c0_i32 : i32
    %1 = arith.extui %0 : i1 to i32
    %c0_i32_0 = arith.constant 0 : i32
    %2 = arith.cmpi ne, %1, %c0_i32_0 : i32
    scf.if %2 {
      %c0_88 = arith.constant 0 : index
      %c0_89 = arith.constant 0 : index
      %177 = vector.load %arg1[%c0_88, %c0_89] : memref<16x32xf32, #tpu.memory_space<vmem>>, vector<16x32xf32>
      %c0_90 = arith.constant 0 : index
      %c0_91 = arith.constant 0 : index
      %178 = vector.load %arg17[%c0_90, %c0_91] : memref<16x32xf32, #tpu.memory_space<vmem>>, vector<16x32xf32>
      tpu.vector_store %arg17[%c0_90, %c0_91], %177 {strides = array<i32>} : memref<16x32xf32, #tpu.memory_space<vmem>>, vector<16x32xf32>,
    } else {
    }
    %c0 = arith.constant 0 : index
    %c0_1 = arith.constant 0 : index
    %3 = vector.load %arg17[%c0, %c0_1] : memref<16x32xf32, #tpu.memory_space<vmem>>, vector<16x32xf32>
    %c0_2 = arith.constant 0 : index
    %c0_3 = arith.constant 0 : index
    %4 = vector.load %arg2[%c0_2, %c0_3] : memref<16x16xf32, #tpu.memory_space<vmem>>, vector<16x16xf32>
    %c0_4 = arith.constant 0 : index
    %c0_5 = arith.constant 0 : index
    %c0_6 = arith.constant 0 : index
    %5 = vector.load %arg3[%c0_4, %c0_5, %c0_6] : memref<1x1x32xf32, #tpu.memory_space<vmem>>, vector<1x1x32xf32>
    %6 = vector.shape_cast %5 : vector<1x1x32xf32> to vector<1x32xf32>
    %7 = arith.mulf %3, %3 : vector<16x32xf32>
    %cst = arith.constant dense<0.000000e+00> : vector<16xf32>
    %8 = vector.multi_reduction <add>, %7, %cst [1] : vector<16x32xf32> to vector<16xf32>
    %9 = vector.shape_cast %8 : vector<16xf32> to vector<16x1xf32>
    %cst_7 = arith.constant 3.200000e+01 : f32
    %10 = vector.broadcast %cst_7 : f32 to vector<16x1xf32>
    %11 = arith.divf %9, %10 : vector<16x1xf32>
    %cst_8 = arith.constant 1.1920929E-7 : f32
    %12 = vector.broadcast %cst_8 : f32 to vector<16x1xf32>
    %13 = arith.addf %11, %12 : vector<16x1xf32>
    %14 = math.rsqrt %13 : vector<16x1xf32>
    %15 = vector.broadcast %14 : vector<16x1xf32> to vector<16x32xf32>
    %16 = arith.mulf %3, %15 : vector<16x32xf32>
    %17 = vector.broadcast %6 : vector<1x32xf32> to vector<16x32xf32>
    %18 = arith.mulf %16, %17 : vector<16x32xf32>
    %c0_9 = arith.constant 0 : index
    %c0_10 = arith.constant 0 : index
    %c0_11 = arith.constant 0 : index
    %19 = vector.load %arg5[%c0_9, %c0_10, %c0_11] : memref<1x32x96xbf16, #tpu.memory_space<vmem>>, vector<1x32x96xbf16>
    %20 = vector.shape_cast %19 : vector<1x32x96xbf16> to vector<32x96xbf16>
    %21 = arith.extf %20 : vector<32x96xbf16> to vector<32x96xf32>
    %cst_12 = arith.constant dense<0.000000e+00> : vector<16x96xf32>
    %22 = tpu.matmul %18, %21, %cst_12 {dimension_numbers = #tpu.dot_dimension_numbers<[1], [0], [0], [1], [0, 0, 1, 1], [], []>} : vector<16x32xf32>, vector<32x96xf32>, vector<16x96xf32> -> vector<16x96xf32>
    %cst_13 = arith.constant 0.000000e+00 : f32
    %23 = vector.broadcast %cst_13 : f32 to vector<16x32xf32>
    %24 = vector.extract_strided_slice %22 {offsets = [0, 0], sizes = [16, 8], strides = [1, 1]} : vector<16x96xf32> to vector<16x8xf32>
    %25 = vector.extract_strided_slice %22 {offsets = [0, 32], sizes = [16, 8], strides = [1, 1]} : vector<16x96xf32> to vector<16x8xf32>
    %26 = vector.extract_strided_slice %22 {offsets = [0, 64], sizes = [16, 8], strides = [1, 1]} : vector<16x96xf32> to vector<16x8xf32>
    %27 = tpu.transpose %25, [1, 0] : vector<16x8xf32> -> vector<8x16xf32>
    %cst_14 = arith.constant dense<0.000000e+00> : vector<16x16xf32>
    %28 = tpu.matmul %24, %27, %cst_14 {dimension_numbers = #tpu.dot_dimension_numbers<[1], [0], [0], [1], [0, 0, 1, 1], [], []>} : vector<16x8xf32>, vector<8x16xf32>, vector<16x16xf32> -> vector<16x16xf32>
    %29 = arith.addf %28, %4 : vector<16x16xf32>
    %cst_15 = arith.constant dense<0xFF800000> : vector<16xf32>
    %30 = vector.multi_reduction <maximumf>, %29, %cst_15 [1] : vector<16x16xf32> to vector<16xf32>
    %31 = vector.shape_cast %30 : vector<16xf32> to vector<16x1xf32>
    %32 = vector.broadcast %31 : vector<16x1xf32> to vector<16x16xf32>
    %33 = arith.subf %29, %32 : vector<16x16xf32>
    %34 = math.exp %33 : vector<16x16xf32>
    %cst_16 = arith.constant dense<0.000000e+00> : vector<16xf32>
    %35 = vector.multi_reduction <add>, %34, %cst_16 [1] : vector<16x16xf32> to vector<16xf32>
    %36 = vector.shape_cast %35 : vector<16xf32> to vector<16x1xf32>
    %37 = tpu.reciprocal %36 {approx = true} : vector<16x1xf32> -> vector<16x1xf32>
    %38 = vector.broadcast %37 : vector<16x1xf32> to vector<16x16xf32>
    %39 = arith.mulf %34, %38 : vector<16x16xf32>
    %cst_17 = arith.constant dense<0.000000e+00> : vector<16x8xf32>
    %40 = tpu.matmul %39, %26, %cst_17 {dimension_numbers = #tpu.dot_dimension_numbers<[1], [0], [0], [1], [0, 0, 1, 1], [], []>} : vector<16x16xf32>, vector<16x8xf32>, vector<16x8xf32> -> vector<16x8xf32>
    %c0_18 = arith.constant 0 : index
    %c0_19 = arith.constant 0 : index
    %c0_20 = arith.constant 0 : index
    %c0_21 = arith.constant 0 : index
    %41 = vector.load %arg6[%c0_18, %c0_19, %c0_20, %c0_21] : memref<1x4x8x32xbf16, #tpu.memory_space<vmem>>, vector<1x1x8x32xbf16>
    %42 = vector.shape_cast %41 : vector<1x1x8x32xbf16> to vector<8x32xbf16>
    %43 = arith.extf %42 : vector<8x32xbf16> to vector<8x32xf32>
    %cst_22 = arith.constant dense<0.000000e+00> : vector<16x32xf32>
    %44 = tpu.matmul %40, %43, %cst_22 {dimension_numbers = #tpu.dot_dimension_numbers<[1], [0], [0], [1], [0, 0, 1, 1], [], []>} : vector<16x8xf32>, vector<8x32xf32>, vector<16x32xf32> -> vector<16x32xf32>
    %45 = arith.addf %23, %44 : vector<16x32xf32>
    %46 = vector.extract_strided_slice %22 {offsets = [0, 8], sizes = [16, 8], strides = [1, 1]} : vector<16x96xf32> to vector<16x8xf32>
    %47 = vector.extract_strided_slice %22 {offsets = [0, 40], sizes = [16, 8], strides = [1, 1]} : vector<16x96xf32> to vector<16x8xf32>
    %48 = vector.extract_strided_slice %22 {offsets = [0, 72], sizes = [16, 8], strides = [1, 1]} : vector<16x96xf32> to vector<16x8xf32>
    %49 = tpu.transpose %47, [1, 0] : vector<16x8xf32> -> vector<8x16xf32>
    %cst_23 = arith.constant dense<0.000000e+00> : vector<16x16xf32>
    %50 = tpu.matmul %46, %49, %cst_23 {dimension_numbers = #tpu.dot_dimension_numbers<[1], [0], [0], [1], [0, 0, 1, 1], [], []>} : vector<16x8xf32>, vector<8x16xf32>, vector<16x16xf32> -> vector<16x16xf32>
    %51 = arith.addf %50, %4 : vector<16x16xf32>
    %cst_24 = arith.constant dense<0xFF800000> : vector<16xf32>
    %52 = vector.multi_reduction <maximumf>, %51, %cst_24 [1] : vector<16x16xf32> to vector<16xf32>
    %53 = vector.shape_cast %52 : vector<16xf32> to vector<16x1xf32>
    %54 = vector.broadcast %53 : vector<16x1xf32> to vector<16x16xf32>
    %55 = arith.subf %51, %54 : vector<16x16xf32>
    %56 = math.exp %55 : vector<16x16xf32>
    %cst_25 = arith.constant dense<0.000000e+00> : vector<16xf32>
    %57 = vector.multi_reduction <add>, %56, %cst_25 [1] : vector<16x16xf32> to vector<16xf32>
    %58 = vector.shape_cast %57 : vector<16xf32> to vector<16x1xf32>
    %59 = tpu.reciprocal %58 {approx = true} : vector<16x1xf32> -> vector<16x1xf32>
    %60 = vector.broadcast %59 : vector<16x1xf32> to vector<16x16xf32>
    %61 = arith.mulf %56, %60 : vector<16x16xf32>
    %cst_26 = arith.constant dense<0.000000e+00> : vector<16x8xf32>
    %62 = tpu.matmul %61, %48, %cst_26 {dimension_numbers = #tpu.dot_dimension_numbers<[1], [0], [0], [1], [0, 0, 1, 1], [], []>} : vector<16x16xf32>, vector<16x8xf32>, vector<16x8xf32> -> vector<16x8xf32>
    %c0_27 = arith.constant 0 : index
    %c1 = arith.constant 1 : index
    %c0_28 = arith.constant 0 : index
    %c0_29 = arith.constant 0 : index
    %63 = vector.load %arg6[%c0_27, %c1, %c0_28, %c0_29] : memref<1x4x8x32xbf16, #tpu.memory_space<vmem>>, vector<1x1x8x32xbf16>
    %64 = vector.shape_cast %63 : vector<1x1x8x32xbf16> to vector<8x32xbf16>
    %65 = arith.extf %64 : vector<8x32xbf16> to vector<8x32xf32>
    %cst_30 = arith.constant dense<0.000000e+00> : vector<16x32xf32>
    %66 = tpu.matmul %62, %65, %cst_30 {dimension_numbers = #tpu.dot_dimension_numbers<[1], [0], [0], [1], [0, 0, 1, 1], [], []>} : vector<16x8xf32>, vector<8x32xf32>, vector<16x32xf32> -> vector<16x32xf32>
    %67 = arith.addf %45, %66 : vector<16x32xf32>
    %68 = vector.extract_strided_slice %22 {offsets = [0, 16], sizes = [16, 8], strides = [1, 1]} : vector<16x96xf32> to vector<16x8xf32>
    %69 = vector.extract_strided_slice %22 {offsets = [0, 48], sizes = [16, 8], strides = [1, 1]} : vector<16x96xf32> to vector<16x8xf32>
    %70 = vector.extract_strided_slice %22 {offsets = [0, 80], sizes = [16, 8], strides = [1, 1]} : vector<16x96xf32> to vector<16x8xf32>
    %71 = tpu.transpose %69, [1, 0] : vector<16x8xf32> -> vector<8x16xf32>
    %cst_31 = arith.constant dense<0.000000e+00> : vector<16x16xf32>
    %72 = tpu.matmul %68, %71, %cst_31 {dimension_numbers = #tpu.dot_dimension_numbers<[1], [0], [0], [1], [0, 0, 1, 1], [], []>} : vector<16x8xf32>, vector<8x16xf32>, vector<16x16xf32> -> vector<16x16xf32>
    %73 = arith.addf %72, %4 : vector<16x16xf32>
    %cst_32 = arith.constant dense<0xFF800000> : vector<16xf32>
    %74 = vector.multi_reduction <maximumf>, %73, %cst_32 [1] : vector<16x16xf32> to vector<16xf32>
    %75 = vector.shape_cast %74 : vector<16xf32> to vector<16x1xf32>
    %76 = vector.broadcast %75 : vector<16x1xf32> to vector<16x16xf32>
    %77 = arith.subf %73, %76 : vector<16x16xf32>
    %78 = math.exp %77 : vector<16x16xf32>
    %cst_33 = arith.constant dense<0.000000e+00> : vector<16xf32>
    %79 = vector.multi_reduction <add>, %78, %cst_33 [1] : vector<16x16xf32> to vector<16xf32>
    %80 = vector.shape_cast %79 : vector<16xf32> to vector<16x1xf32>
    %81 = tpu.reciprocal %80 {approx = true} : vector<16x1xf32> -> vector<16x1xf32>
    %82 = vector.broadcast %81 : vector<16x1xf32> to vector<16x16xf32>
    %83 = arith.mulf %78, %82 : vector<16x16xf32>
    %cst_34 = arith.constant dense<0.000000e+00> : vector<16x8xf32>
    %84 = tpu.matmul %83, %70, %cst_34 {dimension_numbers = #tpu.dot_dimension_numbers<[1], [0], [0], [1], [0, 0, 1, 1], [], []>} : vector<16x16xf32>, vector<16x8xf32>, vector<16x8xf32> -> vector<16x8xf32>
    %c0_35 = arith.constant 0 : index
    %c2 = arith.constant 2 : index
    %c0_36 = arith.constant 0 : index
    %c0_37 = arith.constant 0 : index
    %85 = vector.load %arg6[%c0_35, %c2, %c0_36, %c0_37] : memref<1x4x8x32xbf16, #tpu.memory_space<vmem>>, vector<1x1x8x32xbf16>
    %86 = vector.shape_cast %85 : vector<1x1x8x32xbf16> to vector<8x32xbf16>
    %87 = arith.extf %86 : vector<8x32xbf16> to vector<8x32xf32>
    %cst_38 = arith.constant dense<0.000000e+00> : vector<16x32xf32>
    %88 = tpu.matmul %84, %87, %cst_38 {dimension_numbers = #tpu.dot_dimension_numbers<[1], [0], [0], [1], [0, 0, 1, 1], [], []>} : vector<16x8xf32>, vector<8x32xf32>, vector<16x32xf32> -> vector<16x32xf32>
    %89 = arith.addf %67, %88 : vector<16x32xf32>
    %90 = vector.extract_strided_slice %22 {offsets = [0, 24], sizes = [16, 8], strides = [1, 1]} : vector<16x96xf32> to vector<16x8xf32>
    %91 = vector.extract_strided_slice %22 {offsets = [0, 56], sizes = [16, 8], strides = [1, 1]} : vector<16x96xf32> to vector<16x8xf32>
    %92 = vector.extract_strided_slice %22 {offsets = [0, 88], sizes = [16, 8], strides = [1, 1]} : vector<16x96xf32> to vector<16x8xf32>
    %93 = tpu.transpose %91, [1, 0] : vector<16x8xf32> -> vector<8x16xf32>
    %cst_39 = arith.constant dense<0.000000e+00> : vector<16x16xf32>
    %94 = tpu.matmul %90, %93, %cst_39 {dimension_numbers = #tpu.dot_dimension_numbers<[1], [0], [0], [1], [0, 0, 1, 1], [], []>} : vector<16x8xf32>, vector<8x16xf32>, vector<16x16xf32> -> vector<16x16xf32>
    %95 = arith.addf %94, %4 : vector<16x16xf32>
    %cst_40 = arith.constant dense<0xFF800000> : vector<16xf32>
    %96 = vector.multi_reduction <maximumf>, %95, %cst_40 [1] : vector<16x16xf32> to vector<16xf32>
    %97 = vector.shape_cast %96 : vector<16xf32> to vector<16x1xf32>
    %98 = vector.broadcast %97 : vector<16x1xf32> to vector<16x16xf32>
    %99 = arith.subf %95, %98 : vector<16x16xf32>
    %100 = math.exp %99 : vector<16x16xf32>
    %cst_41 = arith.constant dense<0.000000e+00> : vector<16xf32>
    %101 = vector.multi_reduction <add>, %100, %cst_41 [1] : vector<16x16xf32> to vector<16xf32>
    %102 = vector.shape_cast %101 : vector<16xf32> to vector<16x1xf32>
    %103 = tpu.reciprocal %102 {approx = true} : vector<16x1xf32> -> vector<16x1xf32>
    %104 = vector.broadcast %103 : vector<16x1xf32> to vector<16x16xf32>
    %105 = arith.mulf %100, %104 : vector<16x16xf32>
    %cst_42 = arith.constant dense<0.000000e+00> : vector<16x8xf32>
    %106 = tpu.matmul %105, %92, %cst_42 {dimension_numbers = #tpu.dot_dimension_numbers<[1], [0], [0], [1], [0, 0, 1, 1], [], []>} : vector<16x16xf32>, vector<16x8xf32>, vector<16x8xf32> -> vector<16x8xf32>
    %c0_43 = arith.constant 0 : index
    %c3 = arith.constant 3 : index
    %c0_44 = arith.constant 0 : index
    %c0_45 = arith.constant 0 : index
    %107 = vector.load %arg6[%c0_43, %c3, %c0_44, %c0_45] : memref<1x4x8x32xbf16, #tpu.memory_space<vmem>>, vector<1x1x8x32xbf16>
    %108 = vector.shape_cast %107 : vector<1x1x8x32xbf16> to vector<8x32xbf16>
    %109 = arith.extf %108 : vector<8x32xbf16> to vector<8x32xf32>
    %cst_46 = arith.constant dense<0.000000e+00> : vector<16x32xf32>
    %110 = tpu.matmul %106, %109, %cst_46 {dimension_numbers = #tpu.dot_dimension_numbers<[1], [0], [0], [1], [0, 0, 1, 1], [], []>} : vector<16x8xf32>, vector<8x32xf32>, vector<16x32xf32> -> vector<16x32xf32>
    %111 = arith.addf %89, %110 : vector<16x32xf32>
    %112 = arith.addf %3, %111 : vector<16x32xf32>
    %c0_47 = arith.constant 0 : index
    %c0_48 = arith.constant 0 : index
    %c0_49 = arith.constant 0 : index
    %113 = vector.load %arg7[%c0_47, %c0_48, %c0_49] : memref<1x1x32xf32, #tpu.memory_space<vmem>>, vector<1x1x32xf32>
    %114 = vector.shape_cast %113 : vector<1x1x32xf32> to vector<1x32xf32>
    %115 = vector.broadcast %114 : vector<1x32xf32> to vector<16x32xf32>
    %116 = arith.addf %112, %115 : vector<16x32xf32>
    %c0_50 = arith.constant 0 : index
    %c0_51 = arith.constant 0 : index
    %c0_52 = arith.constant 0 : index
    %117 = vector.load %arg4[%c0_50, %c0_51, %c0_52] : memref<1x1x32xf32, #tpu.memory_space<vmem>>, vector<1x1x32xf32>
    %118 = vector.shape_cast %117 : vector<1x1x32xf32> to vector<1x32xf32>
    %119 = arith.mulf %116, %116 : vector<16x32xf32>
    %cst_53 = arith.constant dense<0.000000e+00> : vector<16xf32>
    %120 = vector.multi_reduction <add>, %119, %cst_53 [1] : vector<16x32xf32> to vector<16xf32>
    %121 = vector.shape_cast %120 : vector<16xf32> to vector<16x1xf32>
    %cst_54 = arith.constant 3.200000e+01 : f32
    %122 = vector.broadcast %cst_54 : f32 to vector<16x1xf32>
    %123 = arith.divf %121, %122 : vector<16x1xf32>
    %cst_55 = arith.constant 1.1920929E-7 : f32
    %124 = vector.broadcast %cst_55 : f32 to vector<16x1xf32>
    %125 = arith.addf %123, %124 : vector<16x1xf32>
    %126 = math.rsqrt %125 : vector<16x1xf32>
    %127 = vector.broadcast %126 : vector<16x1xf32> to vector<16x32xf32>
    %128 = arith.mulf %116, %127 : vector<16x32xf32>
    %129 = vector.broadcast %118 : vector<1x32xf32> to vector<16x32xf32>
    %130 = arith.mulf %128, %129 : vector<16x32xf32>
    %c0_56 = arith.constant 0 : index
    %c0_57 = arith.constant 0 : index
    %c0_58 = arith.constant 0 : index
    %131 = vector.load %arg8[%c0_56, %c0_57, %c0_58] : memref<1x32x128xbf16, #tpu.memory_space<vmem>>, vector<1x32x128xbf16>
    %132 = vector.shape_cast %131 : vector<1x32x128xbf16> to vector<32x128xbf16>
    %133 = arith.extf %132 : vector<32x128xbf16> to vector<32x128xf32>
    %cst_59 = arith.constant dense<0.000000e+00> : vector<16x128xf32>
    %134 = tpu.matmul %130, %133, %cst_59 {dimension_numbers = #tpu.dot_dimension_numbers<[1], [0], [0], [1], [0, 0, 1, 1], [], []>} : vector<16x32xf32>, vector<32x128xf32>, vector<16x128xf32> -> vector<16x128xf32>
    %c0_60 = arith.constant 0 : index
    %c0_61 = arith.constant 0 : index
    %c0_62 = arith.constant 0 : index
    %135 = vector.load %arg9[%c0_60, %c0_61, %c0_62] : memref<1x1x128xf32, #tpu.memory_space<vmem>>, vector<1x1x128xf32>
    %136 = vector.shape_cast %135 : vector<1x1x128xf32> to vector<1x128xf32>
    %137 = vector.broadcast %136 : vector<1x128xf32> to vector<16x128xf32>
    %138 = arith.addf %134, %137 : vector<16x128xf32>
    %c0_63 = arith.constant 0 : index
    %c0_64 = arith.constant 0 : index
    %c0_65 = arith.constant 0 : index
    %139 = vector.load %arg10[%c0_63, %c0_64, %c0_65] : memref<1x128x256xbf16, #tpu.memory_space<vmem>>, vector<1x128x256xbf16>
    %140 = vector.shape_cast %139 : vector<1x128x256xbf16> to vector<128x256xbf16>
    %141 = arith.extf %140 : vector<128x256xbf16> to vector<128x256xf32>
    %cst_66 = arith.constant dense<0.000000e+00> : vector<16x256xf32>
    %142 = tpu.matmul %138, %141, %cst_66 {dimension_numbers = #tpu.dot_dimension_numbers<[1], [0], [0], [1], [0, 0, 1, 1], [], []>} : vector<16x128xf32>, vector<128x256xf32>, vector<16x256xf32> -> vector<16x256xf32>
    %c0_67 = arith.constant 0 : index
    %c0_68 = arith.constant 0 : index
    %c0_69 = arith.constant 0 : index
    %143 = vector.load %arg11[%c0_67, %c0_68, %c0_69] : memref<1x1x256xf32, #tpu.memory_space<vmem>>, vector<1x1x256xf32>
    %144 = vector.shape_cast %143 : vector<1x1x256xf32> to vector<1x256xf32>
    %145 = vector.broadcast %144 : vector<1x256xf32> to vector<16x256xf32>
    %146 = arith.addf %142, %145 : vector<16x256xf32>
    %147 = vector.extract_strided_slice %146 {offsets = [0, 0], sizes = [16, 128], strides = [1, 1]} : vector<16x256xf32> to vector<16x128xf32>
    %148 = vector.extract_strided_slice %146 {offsets = [0, 128], sizes = [16, 128], strides = [1, 1]} : vector<16x256xf32> to vector<16x128xf32>
    %149 = arith.negf %147 : vector<16x128xf32>
    %150 = math.exp %149 : vector<16x128xf32>
    %cst_70 = arith.constant 1.000000e+00 : f32
    %151 = vector.broadcast %cst_70 : f32 to vector<16x128xf32>
    %152 = arith.addf %151, %150 : vector<16x128xf32>
    %153 = arith.divf %151, %152 : vector<16x128xf32>
    %154 = arith.mulf %147, %153 : vector<16x128xf32>
    %155 = arith.mulf %154, %148 : vector<16x128xf32>
    %c0_71 = arith.constant 0 : index
    %c0_72 = arith.constant 0 : index
    %c0_73 = arith.constant 0 : index
    %156 = vector.load %arg12[%c0_71, %c0_72, %c0_73] : memref<1x128x128xbf16, #tpu.memory_space<vmem>>, vector<1x128x128xbf16>
    %157 = vector.shape_cast %156 : vector<1x128x128xbf16> to vector<128x128xbf16>
    %158 = arith.extf %157 : vector<128x128xbf16> to vector<128x128xf32>
    %cst_74 = arith.constant dense<0.000000e+00> : vector<16x128xf32>
    %159 = tpu.matmul %155, %158, %cst_74 {dimension_numbers = #tpu.dot_dimension_numbers<[1], [0], [0], [1], [0, 0, 1, 1], [], []>} : vector<16x128xf32>, vector<128x128xf32>, vector<16x128xf32> -> vector<16x128xf32>
    %c0_75 = arith.constant 0 : index
    %c0_76 = arith.constant 0 : index
    %c0_77 = arith.constant 0 : index
    %160 = vector.load %arg13[%c0_75, %c0_76, %c0_77] : memref<1x1x128xf32, #tpu.memory_space<vmem>>, vector<1x1x128xf32>
    %161 = vector.shape_cast %160 : vector<1x1x128xf32> to vector<1x128xf32>
    %162 = vector.broadcast %161 : vector<1x128xf32> to vector<16x128xf32>
    %163 = arith.addf %159, %162 : vector<16x128xf32>
    %c0_78 = arith.constant 0 : index
    %c0_79 = arith.constant 0 : index
    %c0_80 = arith.constant 0 : index
    %164 = vector.load %arg14[%c0_78, %c0_79, %c0_80] : memref<1x128x32xbf16, #tpu.memory_space<vmem>>, vector<1x128x32xbf16>
    %165 = vector.shape_cast %164 : vector<1x128x32xbf16> to vector<128x32xbf16>
    %166 = arith.extf %165 : vector<128x32xbf16> to vector<128x32xf32>
    %cst_81 = arith.constant dense<0.000000e+00> : vector<16x32xf32>
    %167 = tpu.matmul %163, %166, %cst_81 {dimension_numbers = #tpu.dot_dimension_numbers<[1], [0], [0], [1], [0, 0, 1, 1], [], []>} : vector<16x128xf32>, vector<128x32xf32>, vector<16x32xf32> -> vector<16x32xf32>
    %c0_82 = arith.constant 0 : index
    %c0_83 = arith.constant 0 : index
    %c0_84 = arith.constant 0 : index
    %168 = vector.load %arg15[%c0_82, %c0_83, %c0_84] : memref<1x1x32xf32, #tpu.memory_space<vmem>>, vector<1x1x32xf32>
    %169 = vector.shape_cast %168 : vector<1x1x32xf32> to vector<1x32xf32>
    %170 = vector.broadcast %169 : vector<1x32xf32> to vector<16x32xf32>
    %171 = arith.addf %167, %170 : vector<16x32xf32>
    %172 = arith.addf %116, %171 : vector<16x32xf32>
    %c0_85 = arith.constant 0 : index
    %c0_86 = arith.constant 0 : index
    %173 = vector.load %arg17[%c0_85, %c0_86] : memref<16x32xf32, #tpu.memory_space<vmem>>, vector<16x32xf32>
    tpu.vector_store %arg17[%c0_85, %c0_86], %172 {strides = array<i32>} : memref<16x32xf32, #tpu.memory_space<vmem>>, vector<16x32xf32>,
    %c5_i32 = arith.constant 5 : i32
    %174 = arith.cmpi eq, %arg0, %c5_i32 : i32
    %175 = arith.extui %174 : i1 to i32
    %c0_i32_87 = arith.constant 0 : i32
    %176 = arith.cmpi ne, %175, %c0_i32_87 : i32
    scf.if %176 {
      %c0_88 = arith.constant 0 : index
      %c0_89 = arith.constant 0 : index
      %177 = vector.load %arg16[%c0_88, %c0_89] : memref<16x32xf32, #tpu.memory_space<vmem>>, vector<16x32xf32>
      tpu.vector_store %arg16[%c0_88, %c0_89], %172 {strides = array<i32>} : memref<16x32xf32, #tpu.memory_space<vmem>>, vector<16x32xf32>,
    } else {
    }
    return
  }
  func.func @transform_0(%arg0: i32) -> (i32, i32) {
    %c0_i32 = arith.constant 0 : i32
    %c0_i32_0 = arith.constant 0 : i32
    %c0_i32_1 = arith.constant 0 : i32
    return %c0_i32, %c0_i32_0 : i32, i32
  }
  func.func @transform_1(%arg0: i32) -> (i32, i32) {
    %c0_i32 = arith.constant 0 : i32
    %c0_i32_0 = arith.constant 0 : i32
    %c0_i32_1 = arith.constant 0 : i32
    return %c0_i32, %c0_i32_0 : i32, i32
  }
  func.func @transform_2(%arg0: i32) -> (i32, i32, i32) {
    %c0_i32 = arith.constant 0 : i32
    %c0_i32_0 = arith.constant 0 : i32
    %c0_i32_1 = arith.constant 0 : i32
    return %arg0, %c0_i32, %c0_i32_0 : i32, i32, i32
  }
  func.func @transform_3(%arg0: i32) -> (i32, i32, i32) {
    %c0_i32 = arith.constant 0 : i32
    %c0_i32_0 = arith.constant 0 : i32
    %c0_i32_1 = arith.constant 0 : i32
    return %arg0, %c0_i32, %c0_i32_0 : i32, i32, i32
  }
  func.func @transform_4(%arg0: i32) -> (i32, i32, i32) {
    %c0_i32 = arith.constant 0 : i32
    %c0_i32_0 = arith.constant 0 : i32
    %c0_i32_1 = arith.constant 0 : i32
    return %arg0, %c0_i32, %c0_i32_0 : i32, i32, i32
  }
  func.func @transform_5(%arg0: i32) -> (i32, i32, i32, i32) {
    %c0_i32 = arith.constant 0 : i32
    %c0_i32_0 = arith.constant 0 : i32
    %c0_i32_1 = arith.constant 0 : i32
    %c0_i32_2 = arith.constant 0 : i32
    return %arg0, %c0_i32, %c0_i32_0, %c0_i32_1 : i32, i32, i32, i32
  }
  func.func @transform_6(%arg0: i32) -> (i32, i32, i32) {
    %c0_i32 = arith.constant 0 : i32
    %c0_i32_0 = arith.constant 0 : i32
    %c0_i32_1 = arith.constant 0 : i32
    return %arg0, %c0_i32, %c0_i32_0 : i32, i32, i32
  }
  func.func @transform_7(%arg0: i32) -> (i32, i32, i32) {
    %c0_i32 = arith.constant 0 : i32
    %c0_i32_0 = arith.constant 0 : i32
    %c0_i32_1 = arith.constant 0 : i32
    return %arg0, %c0_i32, %c0_i32_0 : i32, i32, i32
  }
  func.func @transform_8(%arg0: i32) -> (i32, i32, i32) {
    %c0_i32 = arith.constant 0 : i32
    %c0_i32_0 = arith.constant 0 : i32
    %c0_i32_1 = arith.constant 0 : i32
    return %arg0, %c0_i32, %c0_i32_0 : i32, i32, i32
  }
  func.func @transform_9(%arg0: i32) -> (i32, i32, i32) {
    %c0_i32 = arith.constant 0 : i32
    %c0_i32_0 = arith.constant 0 : i32
    %c0_i32_1 = arith.constant 0 : i32
    return %arg0, %c0_i32, %c0_i32_0 : i32, i32, i32
  }
  func.func @transform_10(%arg0: i32) -> (i32, i32, i32) {
    %c0_i32 = arith.constant 0 : i32
    %c0_i32_0 = arith.constant 0 : i32
    %c0_i32_1 = arith.constant 0 : i32
    return %arg0, %c0_i32, %c0_i32_0 : i32, i32, i32
  }
  func.func @transform_11(%arg0: i32) -> (i32, i32, i32) {
    %c0_i32 = arith.constant 0 : i32
    %c0_i32_0 = arith.constant 0 : i32
    %c0_i32_1 = arith.constant 0 : i32
    return %arg0, %c0_i32, %c0_i32_0 : i32, i32, i32
  }
  func.func @transform_12(%arg0: i32) -> (i32, i32, i32) {
    %c0_i32 = arith.constant 0 : i32
    %c0_i32_0 = arith.constant 0 : i32
    %c0_i32_1 = arith.constant 0 : i32
    return %arg0, %c0_i32, %c0_i32_0 : i32, i32, i32
  }
  func.func @transform_13(%arg0: i32) -> (i32, i32, i32) {
    %c0_i32 = arith.constant 0 : i32
    %c0_i32_0 = arith.constant 0 : i32
    %c0_i32_1 = arith.constant 0 : i32
    return %arg0, %c0_i32, %c0_i32_0 : i32, i32, i32
  }
  func.func @transform_14(%arg0: i32) -> (i32, i32, i32) {
    %c0_i32 = arith.constant 0 : i32
    %c0_i32_0 = arith.constant 0 : i32
    %c0_i32_1 = arith.constant 0 : i32
    return %arg0, %c0_i32, %c0_i32_0 : i32, i32, i32
  }
  func.func @transform_15(%arg0: i32) -> (i32, i32) {
    %c0_i32 = arith.constant 0 : i32
    %c0_i32_0 = arith.constant 0 : i32
    %c0_i32_1 = arith.constant 0 : i32
    return %c0_i32, %c0_i32_0 : i32, i32
  }
}

</mosaic_0001>

<bundles_post_ra>
// kernel: tpu_custom_call.1
= control target key start
LH: loop header
LB: loop body
LE: loop exit
PB: predicated region body
PF: predicated region fallthrough
CT: control target
= control target key end

     0   :  { %s4736_s0 = inlined_call_operand.vmem [shape: f32[16,32], index: 0, kind: input, shape index: {}]   ;;  %s4737_s1 = inlined_call_operand.hbm [shape: f32[16,16], index: 1, kind: input, shape index: {}]   ;;  %s4738_s2 = inlined_call_operand.hbm [shape: f32[6,1,32], index: 2, kind: input, shape index: {}]   ;;  %s4739_s3 = inlined_call_operand.hbm [shape: f32[6,1,32], index: 3, kind: input, shape index: {}]   ;;  %s4740_s4 = inlined_call_operand.vmem [shape: bf16[6,32,96], index: 4, kind: input, shape index: {}]   ;;  %s4741_s5 = inlined_call_operand.hbm [shape: bf16[6,4,8,32], index: 5, kind: input, shape index: {}]   ;;  %s4742_s6 = inlined_call_operand.hbm [shape: f32[6,1,32], index: 6, kind: input, shape index: {}]   ;;  %s4743_s7 = inlined_call_operand.hbm [shape: bf16[6,32,128], index: 7, kind: input, shape index: {}]   ;;  %s4744_s8 = inlined_call_operand.hbm [shape: f32[6,1,128], index: 8, kind: input, shape index: {}]   ;;  %s4745_s9 = inlined_call_operand.hbm [shape: bf16[6,128,256], index: 9, kind: input, shape index: {}]   ;;  %s4746_s10 = inlined_call_operand.hbm [shape: f32[6,1,256], index: 10, kind: input, shape index: {}]   ;;  %s4747_s11 = inlined_call_operand.vmem [shape: bf16[6,128,128], index: 11, kind: input, shape index: {}]   ;;  %s4748_s12 = inlined_call_operand.hbm [shape: f32[6,1,128], index: 12, kind: input, shape index: {}]   ;;  %s4749_s13 = inlined_call_operand.vmem [shape: bf16[6,128,32], index: 13, kind: input, shape index: {}]   ;;  %s4750_s14 = inlined_call_operand.hbm [shape: f32[6,1,32], index: 14, kind: input, shape index: {}]   ;;  %s4751_s15 = inlined_call_operand.hbm [shape: f32[16,32], index: 15, kind: output, shape index: {}]  }
   0x1   :  { %4766 = sst [smem:[#allocation32_spill]] %s4736_s0 }
   0x2   :  { %4767 = sst [smem:[#allocation33_spill]] %s4737_s1 }
   0x3   :  { %4768 = sst [smem:[#allocation34_spill]] %s4738_s2 }
   0x4   :  { %4769 = sst [smem:[#allocation35_spill]] %s4739_s3 }
   0x5   :  { %4770 = sst [smem:[#allocation36_spill]] %s4740_s4 }
   0x6   :  { %4771 = sst [smem:[#allocation37_spill]] %s4741_s5 }
   0x7   :  { %4772 = sst [smem:[#allocation38_spill]] %s4743_s7 }
   0x8   :  { %4773 = sst [smem:[#allocation39_spill]] %s4745_s9 }
   0x9   :  { %4774 = sst [smem:[#allocation40_spill]] %s4747_s11 }
   0xa   :  { %4775 = sst [smem:[#allocation41_spill]] %s4749_s13 }
   0xb   :  { %4776 = sst [smem:[#allocation42_spill]] %s4751_s15 }
   0xc   :  { %20 = vsyncpa [#allocation4], 0 }
   0xd   :  { %21 = vsyncpa [#allocation7], 0 }
   0xe   :  { %23 = vsyncpa [#allocation7 + $0x1], 0 }
   0xf   :  { %24 = vsyncpa [#allocation10], 0 }
  0x10   :  { %26 = vsyncpa [#allocation10 + $0x1], 0 }
  0x11   :  { %27 = vsyncpa [#allocation13], 0 }
  0x12   :  { %29 = vsyncpa [#allocation13 + $0x1], 0 }
  0x13   :  { %30 = vsyncpa [#allocation16], 0 }
  0x14   :  { %32 = vsyncpa [#allocation16 + $0x1], 0 }
  0x15   :  { %33 = vsyncpa [#allocation19], 0 }
  0x16   :  { %35 = vsyncpa [#allocation19 + $0x1], 0 }
  0x17   :  { %36 = vsyncpa [#allocation5], 0  ;;  %s4073_s18 = smov 0   ;;  %s4075_s19 = smov 0  }
  0x18   :  { %s4077_s20 = smov 0   ;;  %s4079_s21 = smov 0  }
  0x19 LB: > { %4777 = sst [smem:[#allocation29_spill]] %s3957_s20  ;;  %s4094_s22 = sadd.s32 1, %s3961_s21   ;;  %s3961_s21 = sphi %s4079_s21, %s4816_s21   ;;  %s3957_s20 = sphi %s4077_s20, %s4818_s20   ;;  %s3953_s19 = sphi %s4075_s19, %s4820_s19   ;;  %s3949_s18 = sphi %s4073_s18, %s4819_s18  }
  0x1a   : > { %4778 = sst [smem:[#allocation30_spill]] %s4094_s22  ;;  %s91_s23 = sadd.s32 1, %s3957_s20 }
  0x1b   : > { %s88_s24 = ssub.s32 %s3961_s21, %s4094_s22  ;;  %p98_p0 = scmp.ne.s32.totalorder %s3957_s20, %s3953_s19 }
  0x1c   : > { %p89_p1 = scmp.eq.s32.totalorder %s88_s24, 0  ;;  %p99_p2 = scmp.eq.s32.totalorder %s3961_s21, 0 }
  0x1d   : > { %p3469_p3 = scmp.lt.s32.totalorder %s3961_s21, 6  ;;  %s4107_s26 = sand.u32 1, %s3961_s21  }
  0x1e   : > { %s4104_s25 = scalar_select %p89_p1, %s3957_s20, %s91_s23  }
  0x1f   : > { %p100_p4 = por %p99_p2, %p98_p0  ;;  %s4110_s27 = sand.u32 1, %s3957_s20  }
  0x20   : > { %4779 = sst [smem:[#allocation31_spill]] %s4104_s25  ;;  %s4113_s28 = sshll.u32 %s3961_s21, 4 }
  0x21   : > { %s4780_s2 = sld [smem:[#allocation34_spill]]  ;;  %s480_s17 = scalar_lea.vmem [#allocation6], %s4110_s27 }
  0x22   : > { %s487_s23 = sshll.u32 %s480_s17, 4  ;;  %p4124_p5 = pnand %p3469_p3, %p100_p4  ;;  %s4122_s23 = int_to_ptr.vmem [resolvable:$true] %s487_s23 }
  0x24   : > { %p4134_p7 = pneg %p4124_p5 }
  0x27   : > { %s4119_s16 = scalar_lea.hbm %s4780_s2, %s4113_s28  ;;  %s3578_s15 = scalar_lea.hbm %s4780_s2, 96 }
  0x28   : > { %s3573_s22 = scalar_lea.hbm %s4119_s16, 16  ;;  %p3579_p10 = scmp.lt.s32.totalorder %s4119_s16, %s4780_s2 }
  0x29   : > { %p3574_p6 = scmp.ne.s32.totalorder %s4119_s16, %s3573_s22  ;;  %p3580_p11 = scmp.lt.s32.totalorder %s3578_s15, %s3573_s22 }
  0x2b   : > { %p3576_p8 = pnand %p4134_p7, %p3574_p6  ;;  %p3581_p12 = por %p3580_p11, %p3579_p10 }
  0x2d   : > { %p3577_p9 = pneg %p3576_p8 }
  0x2f   : > { %p3582_p13 = pnand %p3581_p12, %p3577_p9 }
  0x31   : > { %3585 = shalt.err (!%p3582_p13)
}
  0x32   : > { %s3586_s25 = scalar_lea.vmem %s4122_s23, 16  ;;  %s3963_s20 = smov [#allocation6]  }
  0x33   : > { %p3587_p0 = scmp.ne.s32.totalorder %s4122_s23, %s3586_s25  ;;  %s3591_s30 = sshll.u32 %s3963_s20, 4  ;;  %s3592_s30 = int_to_ptr.vmem [resolvable:$false] %s3591_s30 }
  0x34   : > { %s3593_s17 = scalar_lea.vmem %s3592_s30, 32  ;;  %p3594_p3 = scmp.lt.s32.totalorder %s4122_s23, %s3592_s30 }
  0x35   : > { %p3589_p1 = pnand %p3587_p0, %p4134_p7  ;;  %p3595_p4 = scmp.lt.s32.totalorder %s3593_s17, %s3586_s25 }
  0x37   : > { %p3590_p2 = pneg %p3589_p1  ;;  %p3596_p6 = por %p3595_p4, %p3594_p3 }
  0x39   : > { %p3597_p8 = pnand %p3596_p6, %p3590_p2 }
  0x3b   : > { %3600 = shalt.err (!%p3597_p8)
}
  0x3c   : > { %s4783_s0 = scalar_lea.sflag [#allocation7], %s4107_s26  ;;  %s3042_s13 = sshll.u32 %s3961_s21, 8 }
  0x3d   : > { %3440 = dma.hbm_to_vmem [thread:$0]  (!%p4124_p5), %s4119_s16, 16, %s4122_s23, %s4783_s0  }
  0x3e   : > { %s4784_s15 = sshll.u32 %s4110_s27, 4  ;;  %s4785_s5 = sld [smem:[#allocation37_spill]] }
  0x3f   : > { %s523_s20 = scalar_lea.vmem [#allocation9], %s4784_s15  ;;  %s4756_s2 = scalar_lea.sflag [#allocation10], %s4107_s26 }
  0x40   : > { %s530_s22 = sshll.u32 %s523_s20, 4  ;;  %s4168_s22 = int_to_ptr.vmem [resolvable:$true] %s530_s22 }
  0x44   : > { %s4166_s17 = scalar_lea.hbm %s4785_s5, %s3042_s13  ;;  %s3606_s0 = scalar_lea.hbm %s4785_s5, 1536 }
  0x45   : > { %s3601_s11 = scalar_lea.hbm %s4166_s17, 256  ;;  %p3607_p12 = scmp.lt.s32.totalorder %s4166_s17, %s4785_s5 }
  0x46   : > { %p3602_p9 = scmp.ne.s32.totalorder %s4166_s17, %s3601_s11  ;;  %p3608_p13 = scmp.lt.s32.totalorder %s3606_s0, %s3601_s11 }
  0x48   : > { %p3604_p10 = pnand %p3602_p9, %p4134_p7  ;;  %p3609_p0 = por %p3608_p13, %p3607_p12 }
  0x4a   : > { %p3605_p11 = pneg %p3604_p10 }
  0x4c   : > { %p3610_p1 = pnand %p3609_p0, %p3605_p11 }
  0x4e   : > { %3613 = shalt.err (!%p3610_p1)
}
  0x4f   : > { %s3614_s25 = scalar_lea.vmem %s4168_s22, 256  ;;  %s3964_s30 = smov [#allocation9]  }
  0x50   : > { %p3615_p2 = scmp.ne.s32.totalorder %s4168_s22, %s3614_s25  ;;  %s3619_s16 = sshll.u32 %s3964_s30, 4  ;;  %s3620_s16 = int_to_ptr.vmem [resolvable:$false] %s3619_s16 }
  0x51   : > { %s3621_s23 = scalar_lea.vmem %s3620_s16, 512  ;;  %p3622_p6 = scmp.lt.s32.totalorder %s4168_s22, %s3620_s16 }
  0x52   : > { %p3617_p3 = pnand %p3615_p2, %p4134_p7  ;;  %p3623_p8 = scmp.lt.s32.totalorder %s3621_s23, %s3614_s25 }
  0x54   : > { %p3618_p4 = pneg %p3617_p3  ;;  %p3624_p9 = por %p3623_p8, %p3622_p6 }
  0x56   : > { %p3625_p10 = pnand %p3624_p9, %p3618_p4 }
  0x58   : > { %3628 = shalt.err (!%p3625_p10)
}
  0x59   : > { %s3965_s11 = smov 64   ;;  %s3966_s0 = smov 4  }
  0x5a   : > { %3446 = dma.hbm_to_vmem [thread:$0]  (!%p4124_p5), %s4166_s17, 256, %s4168_s22, %s4756_s2, %s3965_s11, %s3965_s11, %s3966_s0  }
  0x5b   : > { %s4786_s7 = sld [smem:[#allocation38_spill]]  ;;  %s4787_s30 = sshll.u32 %s4110_s27, 4 }
  0x5c   : > { %s561_s16 = scalar_lea.vmem [#allocation12], %s4787_s30  ;;  %s4757_s5 = scalar_lea.sflag [#allocation13], %s4107_s26 }
  0x5d   : > { %s568_s23 = sshll.u32 %s561_s16, 4  ;;  %s4205_s23 = int_to_ptr.vmem [resolvable:$true] %s568_s23 }
  0x61   : > { %s4201_s25 = scalar_lea.hbm %s4786_s7, %s3042_s13  ;;  %s3634_s15 = scalar_lea.hbm %s4786_s7, 1536 }
  0x62   : > { %s3629_s4 = scalar_lea.hbm %s4201_s25, 256  ;;  %p3635_p0 = scmp.lt.s32.totalorder %s4201_s25, %s4786_s7 }
  0x63   : > { %p3630_p11 = scmp.ne.s32.totalorder %s4201_s25, %s3629_s4  ;;  %p3636_p1 = scmp.lt.s32.totalorder %s3634_s15, %s3629_s4 }
  0x65   : > { %p3632_p12 = pnand %p3630_p11, %p4134_p7  ;;  %p3637_p2 = por %p3636_p1, %p3635_p0 }
  0x67   : > { %p3633_p13 = pneg %p3632_p12 }
  0x69   : > { %p3638_p3 = pnand %p3637_p2, %p3633_p13 }
  0x6b   : > { %3641 = shalt.err (!%p3638_p3)
}
  0x6c   : > { %s3642_s30 = scalar_lea.vmem %s4205_s23, 256  ;;  %s3967_s16 = smov [#allocation12]  }
  0x6d   : > { %p3643_p4 = scmp.ne.s32.totalorder %s4205_s23, %s3642_s30  ;;  %s3647_s22 = sshll.u32 %s3967_s16, 4  ;;  %s3648_s22 = int_to_ptr.vmem [resolvable:$false] %s3647_s22 }
  0x6e   : > { %s3649_s17 = scalar_lea.vmem %s3648_s22, 512  ;;  %p3650_p9 = scmp.lt.s32.totalorder %s4205_s23, %s3648_s22 }
  0x6f   : > { %p3645_p6 = pnand %p3643_p4, %p4134_p7  ;;  %p3651_p10 = scmp.lt.s32.totalorder %s3649_s17, %s3642_s30 }
  0x71   : > { %p3646_p8 = pneg %p3645_p6  ;;  %p3652_p11 = por %p3651_p10, %p3650_p9 }
  0x73   : > { %p3653_p12 = pnand %p3652_p11, %p3646_p8 }
  0x75   : > { %3656 = shalt.err (!%p3653_p12)
}
  0x76   : > { %3452 = dma.hbm_to_vmem [thread:$0]  (!%p4124_p5), %s4201_s25, 256, %s4205_s23, %s4757_s5, %s3965_s11, %s3965_s11, %s3966_s0  }
  0x77   : > { %s2969_s4 = sshll.u32 %s4110_s27, 7  ;;  %s3044_s15 = sshll.u32 %s3961_s21, 11 }
  0x78   : > { %s4788_s9 = sld [smem:[#allocation39_spill]]  ;;  %s599_s16 = scalar_lea.vmem [#allocation15], %s2969_s4 }
  0x79   : > { %s606_s22 = sshll.u32 %s599_s16, 4  ;;  %s4758_s17 = scalar_lea.sflag [#allocation16], %s4107_s26  ;;  %s4240_s22 = int_to_ptr.vmem [resolvable:$true] %s606_s22 }
  0x7e   : > { %s4238_s30 = scalar_lea.hbm %s4788_s9, %s3044_s15  ;;  %s3662_s25 = scalar_lea.hbm %s4788_s9, 12288 }
  0x7f   : > { %s3657_s2 = scalar_lea.hbm %s4238_s30, 2048  ;;  %p3663_p2 = scmp.lt.s32.totalorder %s4238_s30, %s4788_s9 }
  0x80   : > { %p3658_p13 = scmp.ne.s32.totalorder %s4238_s30, %s3657_s2  ;;  %p3664_p3 = scmp.lt.s32.totalorder %s3662_s25, %s3657_s2 }
  0x82   : > { %p3660_p0 = pnand %p3658_p13, %p4134_p7  ;;  %p3665_p4 = por %p3664_p3, %p3663_p2 }
  0x84   : > { %p3661_p1 = pneg %p3660_p0 }
  0x86   : > { %p3666_p6 = pnand %p3665_p4, %p3661_p1 }
  0x88   : > { %3669 = shalt.err (!%p3666_p6)
}
  0x89   : > { %s3670_s4 = scalar_lea.vmem %s4240_s22, 2048  ;;  %s3968_s13 = smov [#allocation15]  }
  0x8a   : > { %p3671_p8 = scmp.ne.s32.totalorder %s4240_s22, %s3670_s4  ;;  %s3675_s20 = sshll.u32 %s3968_s13, 4  ;;  %s3676_s20 = int_to_ptr.vmem [resolvable:$false] %s3675_s20 }
  0x8b   : > { %s3677_s16 = scalar_lea.vmem %s3676_s20, 4096  ;;  %p3678_p11 = scmp.lt.s32.totalorder %s4240_s22, %s3676_s20 }
  0x8c   : > { %p3673_p9 = pnand %p3671_p8, %p4134_p7  ;;  %p3679_p12 = scmp.lt.s32.totalorder %s3677_s16, %s3670_s4 }
  0x8e   : > { %p3674_p10 = pneg %p3673_p9  ;;  %p3680_p13 = por %p3679_p12, %p3678_p11 }
  0x90   : > { %p3681_p0 = pnand %p3680_p13, %p3674_p10 }
  0x92   : > { %3684 = shalt.err (!%p3681_p0)
}
  0x93   : > { %s4759_s2 = smov 128   ;;  %s4763_s11 = smov 8  }
  0x94   : > { %3458 = dma.hbm_to_vmem [thread:$0]  (!%p4124_p5), %s4238_s30, 2048, %s4240_s22, %s4758_s17, %s4759_s2, %s4759_s2, %s4763_s11  }
  0x95   : > { %s4272_s23 = scalar_lea.hbm %s4748_s12, %s4113_s28  ;;  %s646_s15 = scalar_lea.vmem [#allocation18], %s4110_s27 }
  0x96   : > { %s653_s4 = sshll.u32 %s646_s15, 4  ;;  %s4760_s13 = scalar_lea.sflag [#allocation19], %s4107_s26  ;;  %s654_s4 = int_to_ptr.vmem [resolvable:$true] %s653_s4 }
  0x97   : > { %s3685_s20 = scalar_lea.hbm %s4272_s23, 16  ;;  %s3690_s30 = scalar_lea.hbm %s4748_s12, 96 }
  0x98   : > { %p3686_p1 = scmp.ne.s32.totalorder %s4272_s23, %s3685_s20  ;;  %p3691_p4 = scmp.lt.s32.totalorder %s4272_s23, %s4748_s12 }
  0x99   : > { %p3692_p6 = scmp.lt.s32.totalorder %s3690_s30, %s3685_s20 }
  0x9a   : > { %p3688_p2 = pnand %p3686_p1, %p4134_p7 }
  0x9b   : > { %p3693_p8 = por %p3692_p6, %p3691_p4 }
  0x9c   : > { %p3689_p3 = pneg %p3688_p2 }
  0x9e   : > { %p3694_p9 = pnand %p3693_p8, %p3689_p3 }
  0xa0   : > { %3697 = shalt.err (!%p3694_p9)
}
  0xa1   : > { %s3698_s25 = scalar_lea.vmem %s654_s4, 16  ;;  %s3971_s15 = smov [#allocation18]  }
  0xa2   : > { %p3699_p10 = scmp.ne.s32.totalorder %s654_s4, %s3698_s25  ;;  %s3703_s17 = sshll.u32 %s3971_s15, 4  ;;  %s3704_s17 = int_to_ptr.vmem [resolvable:$false] %s3703_s17 }
  0xa3   : > { %s3705_s2 = scalar_lea.vmem %s3704_s17, 32  ;;  %p3706_p13 = scmp.lt.s32.totalorder %s654_s4, %s3704_s17 }
  0xa4   : > { %p3701_p11 = pnand %p3699_p10, %p4134_p7  ;;  %p3707_p0 = scmp.lt.s32.totalorder %s3705_s2, %s3698_s25 }
  0xa6   : > { %p3702_p12 = pneg %p3701_p11  ;;  %p3708_p1 = por %p3707_p0, %p3706_p13 }
  0xa8   : > { %p3709_p2 = pnand %p3708_p1, %p3702_p12 }
  0xaa   : > { %3712 = shalt.err (!%p3709_p2)
}
  0xab   : > { %3464 = dma.hbm_to_vmem [thread:$0]  (!%p4124_p5), %s4272_s23, 16, %s654_s4, %s4760_s13  }
  0xac   : > { %s4295_s5 = sadd.s32 4294967295, %s3961_s21   ;;  %p104_p3 = scmp.ne.s32.totalorder %s3953_s19, %s3949_s18 }
  0xad   : > { %p4761_p4 = scmp.eq.s32.totalorder %s4295_s5, 0  ;;  %p2956_p6 = scmp.ge.s32.totalorder %s3961_s21, 1 }
  0xae   : > { %p448_p8 = scmp.lt.s32.totalorder %s3961_s21, 7  ;;  %s3972_s23 = smov [#allocation3]  }
  0xaf   : > { %p4304_p9 = por %p4761_p4, %p104_p3  ;;  %s463_s4 = sshll.u32 %s3972_s23, 4  ;;  %s4315_s4 = int_to_ptr.vmem [resolvable:$true] %s463_s4 }
  0xb0   : > { %p4309_p11 = pnand %p2956_p6, %p448_p8  ;;  %s4791_s3 = sld [smem:[#allocation35_spill]] }
  0xb1   : > { %s4789_s17 = scalar_select %p4304_p9, 1, 0 }
  0xb2   : > { %s4790_s2 = scalar_select %p4309_p11, 1, 0 }
  0xb3   : > { %p3433_p12 = pneg %p4309_p11  ;;  %s497_s30 = scalar_lea.vmem [#allocation8], %s4110_s27 }
  0xb4   : > { %s504_s22 = sshll.u32 %s497_s30, 4  ;;  %s505_s22 = int_to_ptr.vmem [resolvable:$true] %s504_s22 }
  0xb5   : > { %p4326_p13 = pnand %p3433_p12, %p4761_p4 }
  0xb6   : > { %s4321_s16 = scalar_lea.hbm %s4791_s3, %s4113_s28  ;;  %s3718_s18 = scalar_lea.hbm %s4791_s3, 96 }
  0xb7   : > { %s4792_s0 = scalar_select %p4326_p13, 1, 0 }
  0xb8   : > { %s3713_s25 = scalar_lea.hbm %s4321_s16, 16  ;;  %p3719_p3 = scmp.lt.s32.totalorder %s4321_s16, %s4791_s3 }
  0xb9   : > { %p3714_p0 = scmp.ne.s32.totalorder %s4321_s16, %s3713_s25  ;;  %p3720_p6 = scmp.lt.s32.totalorder %s3718_s18, %s3713_s25 }
  0xbb   : > { %p3716_p1 = pnand %p3714_p0, %p4134_p7  ;;  %p3721_p8 = por %p3720_p6, %p3719_p3 }
  0xbd   : > { %p3717_p2 = pneg %p3716_p1 }
  0xbf   : > { %p3722_p12 = pnand %p3721_p8, %p3717_p2 }
  0xc1   : > { %3725 = shalt.err (!%p3722_p12)
}
  0xc2   : > { %s3726_s30 = scalar_lea.vmem %s505_s22, 16  ;;  %s3973_s11 = smov [#allocation8]  }
  0xc3   : > { %p3727_p10 = scmp.ne.s32.totalorder %s505_s22, %s3726_s30  ;;  %s3731_s7 = sshll.u32 %s3973_s11, 4  ;;  %s3732_s7 = int_to_ptr.vmem [resolvable:$false] %s3731_s7 }
  0xc4   : > { %s3733_s9 = scalar_lea.vmem %s3732_s7, 32  ;;  %p3734_p0 = scmp.lt.s32.totalorder %s505_s22, %s3732_s7 }
  0xc5   : > { %p3729_p4 = pnand %p3727_p10, %p4134_p7  ;;  %p3735_p1 = scmp.lt.s32.totalorder %s3733_s9, %s3726_s30 }
  0xc7   : > { %p3730_p9 = pneg %p3729_p4  ;;  %p3736_p11 = por %p3735_p1, %p3734_p0 }
  0xc9   : > { %p3737_p13 = pnand %p3736_p11, %p3730_p9 }
  0xcb   : > { %3740 = shalt.err (!%p3737_p13)
}
  0xcc   : > { %s4793_s13 = scalar_lea.sflag [#allocation7], %s4107_s26  ;;  %p4794_p4 = scmp.ne.s32.totalorder %s4792_s0, 0 }
  0xcd   : > { %3443 = dma.hbm_to_vmem [thread:$0]  (!%p4124_p5), %s4321_s16, 16, %s505_s22, %s4793_s13  }
  0xce   : > { %p3743_p10 = pneg %p4794_p4  ;;  %s3752_s11 = scalar_lea.vmem %s4315_s4, 256 }
  0xcf   : > { %p3753_p2 = scmp.ne.s32.totalorder %s4315_s4, %s3752_s11  ;;  %p3760_p8 = scmp.lt.s32.totalorder %s4315_s4, %s4315_s4 }
  0xd0   : > { %p3761_p9 = scmp.lt.s32.totalorder %s3752_s11, %s3752_s11 }
  0xd1   : > { %p3755_p3 = pnand %p3753_p2, %p3743_p10 }
  0xd2   : > { %p3762_p11 = por %p3761_p9, %p3760_p8 }
  0xd3   : > { %p3756_p6 = pneg %p3755_p3 }
  0xd5   : > { %p3763_p13 = pnand %p3762_p11, %p3756_p6 }
  0xd7   : > { %3766 = shalt.err (!%p3763_p13)
}
  0xd8   : > { %s4795_s7 = smov 8   ;;  %s4796_s9 = smov 128  }
  0xd9   : > { %s4797_s1 = sld [smem:[#allocation33_spill]]  ;;  %s548_s23 = scalar_lea.hbm %s4742_s6, %s4113_s28 }
  0xda   : > { %s543_s18 = scalar_lea.vmem [#allocation11], %s4110_s27  ;;  %s3767_s30 = scalar_lea.hbm %s548_s23, 16 }
  0xdb   : > { %s550_s20 = sshll.u32 %s543_s18, 4  ;;  %p3768_p12 = scmp.ne.s32.totalorder %s548_s23, %s3767_s30  ;;  %s551_s20 = int_to_ptr.vmem [resolvable:$true] %s550_s20 }
  0xdc   : > { %s3772_s11 = scalar_lea.hbm %s4742_s6, 96 }
  0xdd   : > { %p3770_p0 = pnand %p3768_p12, %p4134_p7  ;;  %p3774_p10 = scmp.lt.s32.totalorder %s3772_s11, %s3767_s30 }
  0xdf   : > { %3436 = dma.hbm_to_vmem [thread:$0]  (!%p4794_p4), %s4797_s1, 256, %s4315_s4, [#allocation4], %s4796_s9, %s4796_s9, %s4795_s7  }
  0xe0   : > { %p3771_p1 = pneg %p3770_p0  ;;  %p3773_p4 = scmp.lt.s32.totalorder %s548_s23, %s4742_s6 }
  0xe2   : > { %p3775_p2 = por %p3774_p10, %p3773_p4 }
  0xe4   : > { %p3776_p3 = pnand %p3775_p2, %p3771_p1 }
  0xe6   : > { %3779 = shalt.err (!%p3776_p3)
}
  0xe7   : > { %s3780_s4 = scalar_lea.vmem %s551_s20, 16  ;;  %s3974_s7 = smov [#allocation11]  }
  0xe8   : > { %p3781_p6 = scmp.ne.s32.totalorder %s551_s20, %s3780_s4  ;;  %s3785_s9 = sshll.u32 %s3974_s7, 4  ;;  %s3786_s9 = int_to_ptr.vmem [resolvable:$false] %s3785_s9 }
  0xe9   : > { %s3787_s22 = scalar_lea.vmem %s3786_s9, 32  ;;  %p3788_p11 = scmp.lt.s32.totalorder %s551_s20, %s3786_s9 }
  0xea   : > { %p3783_p8 = pnand %p3781_p6, %p4134_p7  ;;  %p3789_p13 = scmp.lt.s32.totalorder %s3787_s22, %s3780_s4 }
  0xec   : > { %p3784_p9 = pneg %p3783_p8  ;;  %p3790_p12 = por %p3789_p13, %p3788_p11 }
  0xee   : > { %p3791_p0 = pnand %p3790_p12, %p3784_p9 }
  0xf0   : > { %3794 = shalt.err (!%p3791_p0)
}
  0xf1   : > { %s4798_s15 = scalar_lea.sflag [#allocation10], %s4107_s26  ;;  %s4386_s0 = scalar_lea.hbm %s4744_s8, %s4113_s28 }
  0xf2   : > { %3449 = dma.hbm_to_vmem [thread:$0]  (!%p4124_p5), %s548_s23, 16, %s551_s20, %s4798_s15  }
  0xf3   : > { %s581_s13 = scalar_lea.vmem [#allocation14], %s4110_s27  ;;  %s2972_s25 = sshll.u32 %s4110_s27, 1 }
  0xf4   : > { %s588_s11 = sshll.u32 %s581_s13, 4  ;;  %s3795_s16 = scalar_lea.hbm %s4386_s0, 16  ;;  %s589_s11 = int_to_ptr.vmem [resolvable:$true] %s588_s11 }
  0xf5   : > { %p3796_p1 = scmp.ne.s32.totalorder %s4386_s0, %s3795_s16  ;;  %s3800_s23 = scalar_lea.hbm %s4744_s8, 96 }
  0xf6   : > { %p3801_p2 = scmp.lt.s32.totalorder %s4386_s0, %s4744_s8  ;;  %p3802_p3 = scmp.lt.s32.totalorder %s3800_s23, %s3795_s16 }
  0xf7   : > { %p3798_p4 = pnand %p3796_p1, %p4134_p7 }
  0xf8   : > { %p3803_p6 = por %p3802_p3, %p3801_p2 }
  0xf9   : > { %p3799_p10 = pneg %p3798_p4 }
  0xfb   : > { %p3804_p8 = pnand %p3803_p6, %p3799_p10 }
  0xfd   : > { %3807 = shalt.err (!%p3804_p8)
}
  0xfe   : > { %s3808_s22 = scalar_lea.vmem %s589_s11, 16  ;;  %s3975_s15 = smov [#allocation14]  }
  0xff   : > { %p3809_p9 = scmp.ne.s32.totalorder %s589_s11, %s3808_s22  ;;  %s3813_s18 = sshll.u32 %s3975_s15, 4  ;;  %s3814_s18 = int_to_ptr.vmem [resolvable:$false] %s3813_s18 }
 0x100   : > { %s3815_s30 = scalar_lea.vmem %s3814_s18, 32  ;;  %p3816_p12 = scmp.lt.s32.totalorder %s589_s11, %s3814_s18 }
 0x101   : > { %p3811_p11 = pnand %p3809_p9, %p4134_p7  ;;  %p3817_p0 = scmp.lt.s32.totalorder %s3815_s30, %s3808_s22 }
 0x103   : > { %p3812_p13 = pneg %p3811_p11  ;;  %p3818_p1 = por %p3817_p0, %p3816_p12 }
 0x105   : > { %p3819_p4 = pnand %p3818_p1, %p3812_p13 }
 0x107   : > { %3822 = shalt.err (!%p3819_p4)
}
 0x108   : > { %s4799_s13 = scalar_lea.sflag [#allocation13], %s4107_s26  ;;  %s3045_s16 = sshll.u32 %s3961_s21, 5 }
 0x109   : > { %3455 = dma.hbm_to_vmem [thread:$0]  (!%p4124_p5), %s4386_s0, 16, %s589_s11, %s4799_s13  }
 0x10a   : > { %s626_s23 = scalar_lea.hbm %s4746_s10, %s3045_s16  ;;  %s620_s20 = scalar_lea.vmem [#allocation17], %s2972_s25 }
 0x10b   : > { %s628_s9 = sshll.u32 %s620_s20, 4  ;;  %s3823_s22 = scalar_lea.hbm %s626_s23, 32  ;;  %s629_s9 = int_to_ptr.vmem [resolvable:$true] %s628_s9 }
 0x10c   : > { %p3824_p10 = scmp.ne.s32.totalorder %s626_s23, %s3823_s22  ;;  %s3828_s30 = scalar_lea.hbm %s4746_s10, 192 }
 0x10d   : > { %p3829_p6 = scmp.lt.s32.totalorder %s626_s23, %s4746_s10  ;;  %p3830_p8 = scmp.lt.s32.totalorder %s3828_s30, %s3823_s22 }
 0x10e   : > { %p3826_p2 = pnand %p3824_p10, %p4134_p7 }
 0x10f   : > { %p3831_p9 = por %p3830_p8, %p3829_p6 }
 0x110   : > { %p3827_p3 = pneg %p3826_p2 }
 0x112   : > { %p3832_p11 = pnand %p3831_p9, %p3827_p3 }
 0x114   : > { %3835 = shalt.err (!%p3832_p11)
}
 0x115   : > { %s3836_s21 = scalar_lea.vmem %s629_s9, 32  ;;  %s3976_s0 = smov [#allocation17]  }
 0x116   : > { %p3837_p13 = scmp.ne.s32.totalorder %s629_s9, %s3836_s21  ;;  %s3841_s11 = sshll.u32 %s3976_s0, 4  ;;  %s3842_s11 = int_to_ptr.vmem [resolvable:$false] %s3841_s11 }
 0x117   : > { %s3843_s25 = scalar_lea.vmem %s3842_s11, 64  ;;  %p3844_p1 = scmp.lt.s32.totalorder %s629_s9, %s3842_s11 }
 0x118   : > { %p3839_p12 = pnand %p3837_p13, %p4134_p7  ;;  %p3845_p4 = scmp.lt.s32.totalorder %s3843_s25, %s3836_s21 }
 0x11a   : > { %p3840_p0 = pneg %p3839_p12  ;;  %p3846_p10 = por %p3845_p4, %p3844_p1 }
 0x11c   : > { %p3847_p2 = pnand %p3846_p10, %p3840_p0 }
 0x11e   : > { %3850 = shalt.err (!%p3847_p2)
}
 0x11f   : > { %s4800_s1 = scalar_lea.sflag [#allocation16], %s4107_s26  ;;  %s676_s16 = scalar_lea.hbm %s4750_s14, %s4113_s28 }
 0x120   : > { %3461 = dma.hbm_to_vmem [thread:$0]  (!%p4124_p5), %s626_s23, 32, %s629_s9, %s4800_s1  }
 0x121   : > { %s671_s4 = scalar_lea.vmem [#allocation20], %s4110_s27  ;;  %s3851_s20 = scalar_lea.hbm %s676_s16, 16 }
 0x122   : > { %s678_s7 = sshll.u32 %s671_s4, 4  ;;  %p3852_p3 = scmp.ne.s32.totalorder %s676_s16, %s3851_s20  ;;  %s679_s7 = int_to_ptr.vmem [resolvable:$true] %s678_s7 }
 0x123   : > { %s3856_s18 = scalar_lea.hbm %s4750_s14, 96  ;;  %p3857_p9 = scmp.lt.s32.totalorder %s676_s16, %s4750_s14 }
 0x124   : > { %p3854_p6 = pnand %p3852_p3, %p4134_p7  ;;  %p3858_p11 = scmp.lt.s32.totalorder %s3856_s18, %s3851_s20 }
 0x126   : > { %p3855_p8 = pneg %p3854_p6  ;;  %p3859_p13 = por %p3858_p11, %p3857_p9 }
 0x128   : > { %p3860_p12 = pnand %p3859_p13, %p3855_p8 }
 0x12a   : > { %3863 = shalt.err (!%p3860_p12)
}
 0x12b   : > { %s3864_s27 = scalar_lea.vmem %s679_s7, 16  ;;  %s3977_s28 = smov [#allocation20]  }
 0x12c   : > { %p3865_p0 = scmp.ne.s32.totalorder %s679_s7, %s3864_s27  ;;  %s3869_s23 = sshll.u32 %s3977_s28, 4  ;;  %s3870_s23 = int_to_ptr.vmem [resolvable:$false] %s3869_s23 }
 0x12d   : > { %s3871_s9 = scalar_lea.vmem %s3870_s23, 32  ;;  %p3872_p10 = scmp.lt.s32.totalorder %s679_s7, %s3870_s23 }
 0x12e   : > { %p3867_p1 = pnand %p3865_p0, %p4134_p7  ;;  %p3873_p2 = scmp.lt.s32.totalorder %s3871_s9, %s3864_s27 }
 0x130   : > { %p3868_p4 = pneg %p3867_p1  ;;  %p3874_p3 = por %p3873_p2, %p3872_p10 }
 0x132   : > { %p3875_p6 = pnand %p3874_p3, %p3868_p4 }
 0x134   : > { %3878 = shalt.err (!%p3875_p6)
}
 0x135   : > { %s4801_s0 = scalar_lea.sflag [#allocation19], %s4107_s26  ;;  %p4802_p8 = scmp.ne.s32.totalorder %s4790_s2, 0 }
 0x136   : > { %3467 = dma.hbm_to_vmem [thread:$0]  (!%p4124_p5), %s676_s16, 16, %s679_s7, %s4801_s0  }
 0x137   : > { %687 = sbr.rel (%p4802_p8) target bundleno = 3698 (0xe72), region = 80  ;;  %p4803_p7 = scmp.eq.s32.totalorder (!%p4802_p8), %s4295_s5, 0 }
 0x13c   : > { %3920 = dma.done.wait (%p4803_p7), [#allocation4], 256   ;;  %p4804_p9 = pmov %p4803_p7 }
 0x13d   : > { %s693_s29 = sand.u32 1, %s4295_s5   ;;  %s4453_s11 = sand.u32 1, %s3953_s19  }
 0x13e   : > { %3922 = vsyncadd (%p4804_p9), [#allocation4], 4294967040  ;;  %s694_s24 = scalar_lea.sflag [#allocation7], %s693_s29  ;;  %s696_s25 = scalar_lea.vmem [#allocation6], %s4453_s11 }
 0x13f   : > { %p4805_p11 = scmp.ne.s32.totalorder %s4789_s17, 0 }
 0x141   : > { %3924 = dma.done.wait (%p4805_p11), %s694_s24, 32  }
 0x142   : > { %3926 = vsyncadd (%p4805_p11), %s694_s24, 4294967264  ;;  %s2979_s26 = sshll.u32 %s4453_s11, 4  ;;  %s710_s1 = scalar_lea.sflag [#allocation10], %s693_s29 }
 0x143   : > { %s4462_s3 = scalar_lea.vmem [#allocation9], %s2979_s26 }
 0x144   : > { %3928 = dma.done.wait (%p4805_p11), %s710_s1, 272  }
 0x145   : > { %3930 = vsyncadd (%p4805_p11), %s710_s1, 4294967024  ;;  %s727_s16 = scalar_lea.sflag [#allocation13], %s693_s29  ;;  %s4469_s4 = scalar_lea.vmem [#allocation12], %s2979_s26 }
 0x146   : > { %3932 = dma.done.wait (%p4805_p11), %s727_s16, 272  }
 0x147   : > { %3934 = vsyncadd (%p4805_p11), %s727_s16, 4294967024  ;;  %s2981_s7 = sshll.u32 %s4453_s11, 7  ;;  %s744_s22 = scalar_lea.sflag [#allocation16], %s693_s29 }
 0x148   : > { %s4477_s15 = scalar_lea.vmem [#allocation15], %s2981_s7 }
 0x149   : > { %3936 = dma.done.wait (%p4805_p11), %s744_s22, 2080  }
 0x14a   : > { %3938 = vsyncadd (%p4805_p11), %s744_s22, 4294965216  ;;  %s2982_s18 = sshll.u32 %s4453_s11, 1  ;;  %s762_s21 = scalar_lea.sflag [#allocation19], %s693_s29 }
 0x14b   : > { %s4484_s30 = scalar_lea.vmem [#allocation17], %s2982_s18 }
 0x14c   : > { %3940 = dma.done.wait (%p4805_p11), %s762_s21, 32  }
 0x14d   : > { %3942 = vsyncadd (%p4805_p11), %s762_s21, 4294967264  ;;  %p868_p5 = scmp.lt.s32.totalorder %s4295_s5, 5  ;;  %s4806_s26 = sld [smem:[#allocation36_spill]] }
 0x14e   : > { %s4807_s29 = sld [smem:[#allocation40_spill]]  ;;  %s772_s20 = scalar_lea.vmem [#allocation20], %s4453_s11 }
 0x14f   : > { %s869_s28 = scalar_select %p868_p5, %s4295_s5, 5 }
 0x150   : > { %s4808_s17 = sld [smem:[#allocation41_spill]]  ;;  %p4809_p13 = scmp.ne.s32.totalorder %s4295_s5, 0 }
 0x151   : > { %s3046_s23 = sshll.u32 %s869_s28, 4  ;;  %s3047_s9 = sshll.u32 %s869_s28, 6 }
 0x152   : > { %886 = sbr.rel (%p4809_p13) target bundleno = 346 (0x15a), region = 128  ;;  %s4810_s13 = sld [smem:[#allocation32_spill]] (!%p4809_p13) }
 0x153   : > { %s872_s1 = scalar_lea.vmem %s4806_s26, %s3046_s23 }
 0x154   : > { %s4499_s22 = scalar_lea.vmem %s4807_s29, %s3047_s9 }
 0x156   : > { %s4504_s21 = scalar_lea.vmem %s4808_s17, %s3047_s9 }
 0x157   : > { %vm889_vm0 = vcmask 261120  }
 0x158   : > { %v887_v0 = vld [vmem:[%s4810_s13] sm:$0xff]  ;;  %v888_v1 = vld [vmem:[%s4810_s13 + $0x8] sm:$0xff] }
 0x159   : > { %890 = vst.msk [vmem:[#allocation2] sm:$0xff] %vm889_vm0, %v887_v0  ;;  %891 = vst.msk [vmem:[#allocation2 + $0x8] sm:$0xff] %vm889_vm0, %v888_v1 }
 0x15a PF: > { %vm899_vm1 = vcmask 261120   ;;  %v3129_v8 = vld [vmem:[%s872_s1 + $0x8] sm:$0xff]   ;;  %v3050_v9 = vld [vmem:[%s872_s1] sm:$0xff]   ;;  %vm1018_vm2 = vcmask 64512   ;;  %s3978_s2 = smov 88   ;;  %s3979_s27 = smov 96  }
 0x15b   : > { %v3055_v10 = vunpack.c.l.bf16 %v3129_v8  ;;  %v3056_v11 = vunpack.c.h.bf16 %v3129_v8  ;;  %v3052_v12 = vunpack.c.h.bf16 %v3050_v9  ;;  %v3051_v13 = vunpack.c.l.bf16 %v3050_v9  ;;  %v2990_v21 = vld [vmem:[%s696_s25] ss:$0 sm:$0xff]  ;;  %s3980_s25 = smov 120   ;;  %v4555_v35 = vld [vmem:[#allocation3 + $0x8] sm:$0xff]  ;;  %v4557_v37 = vld [vmem:[#allocation3] sm:$0xff]  ;;  %s3981_s9 = smov 64  }
 0x15c   : > { %vm1102_vm3 = vcmask 130048   ;;  %s3982_s24 = smov 56   ;;  %s3983_s26 = smov 80  }
 0x15d   : > { %3237 = vmatprep.subr.mxu0 %v3056_v11  ;;  %s3984_s1 = smov 112   ;;  %s3985_s16 = smov 72  }
 0x15e   : > { %3238 = vmatpush3.msra.mxu0 %v3056_v11  ;;  %s3986_s7 = smov 104   ;;  %s3988_s29 = smov 40  }
 0x15f   : > { %3239 = vmatprep.subr.mxu0 %v3055_v10  ;;  %s4811_s18 = scalar_lea.vmem [#allocation11], %s4453_s11  ;;  %s4813_s17 = scalar_lea.vmem [#allocation14], %s4453_s11 }
 0x160   : > { %v4515_v2 = vld [vmem:[#allocation2] sm:$0xff]  ;;  %v4517_v3 = vld [vmem:[#allocation2 + $0x8] sm:$0xff]  ;;  %3240 = vmatpush3.msra.mxu0 %v3055_v10  ;;  %p3037_p12 = scmp.ne.s32.totalorder %s4295_s5, 5 }
 0x161   : > { %v897_v4 = vmul.f32 %v4515_v2, %v4515_v2  ;;  %v898_v5 = vmul.f32 %v4517_v3, %v4517_v3  ;;  %3241 = vmatprep.subr.mxu0 %v3052_v12 }
 0x162   : > { %3242 = vmatpush3.msra.mxu0 %v3052_v12 }
 0x163   : > { %v900_v6 = vsel %vm899_vm1, %v897_v4, 0.0  ;;  %v903_v7 = vsel %vm899_vm1, %v898_v5, 0.0  ;;  %3243 = vmatprep.subr.mxu0 %v3051_v13 }
 0x164   : > { %901 = vadd.xlane.f32.xlu0 %v900_v6  ;;  %3244 = vmatpush3.msra.mxu0 %v3051_v13 }
 0x168   : > { %904 = vadd.xlane.f32.xlu0 %v903_v7 }
 0x1ed   : > { %v902_v14 = vpop.xlane.xlu0 %901 }
 0x1ee   : > { %v907_v15 = vmul.f32 0.03125, %v902_v14 }
 0x1f0   : > { %v909_v16 = vadd.f32 1.1920929e-07, %v907_v15 }
 0x1f1   : > { %v905_v17 = vpop.xlane.xlu0 %904 }
 0x1f2   : > { %3525 = vrsqrt.f32 %v909_v16  ;;  %v908_v18 = vmul.f32 0.03125, %v905_v17 }
 0x1f4   : > { %v910_v19 = vadd.f32 1.1920929e-07, %v908_v18 }
 0x1f6   : > { %3527 = vrsqrt.f32 %v910_v19 }
 0x1ff   : > { %v3526_v20 = vpop.eup %3525 }
 0x200   : > { %v913_v22 = vmul.f32 %v3526_v20, %v4515_v2 }
 0x202   : > { %v921_v23 = vmul.f32 %v2990_v21, %v913_v22 }
 0x203   : > { %v3528_v24 = vpop.eup %3527 }
 0x204   : > { %v914_v25 = vmul.f32 %v3528_v24, %v4517_v3  ;;  %3245 = vmatprep.mubr.msk.f32.mxu0 %vm899_vm1, %v921_v23  ;;  %v4588_v23 = vld [vmem:[%s4462_s3 + $0x4] sm:$0xff]  }
 0x205   : > { %v1416_v24 = vunpack.c.l.bf16 %v4588_v23 }
 0x206   : > { %v922_v26 = vmul.f32 %v2990_v21, %v914_v25  ;;  %v4592_v25 = vld [vmem:[%s4462_s3] ss:$12 sps:$4 sm:$0xff]   ;;  %s3987_s3 = smov 48  }
 0x208   : > { %3246 = vmatmul.mubr.msk.f32.vlgmr.msra.gmra.mxu0 %vm899_vm1, %v922_v26  ;;  %v1213_v26 = vunpack.c.l.bf16 %v4592_v25 }
 0x2c8   : > { %v4531_v27 = vpop.f32.mrf.mxu0 }
 0x2c9   : > { %1220 = vrot.lane.b32.xlu0 %v4531_v27, %s3978_s2  ;;  %1016 = vrot.lane.b32.xlu1 %v4531_v27, %s3979_s27 }
 0x2ca   : > { %v4535_v28 = vpop.f32.mrf.mxu0 }
 0x2cb   : > { %3252 = vmatprep.mubr.msk.f32.mxu0 %vm1018_vm2, %v4535_v28 }
 0x2cd   : > { %1014 = vrot.lane.b32.xlu1 %v4535_v28, %s3979_s27 }
 0x2d1   : > { %1218 = vrot.lane.b32.xlu1 %v4535_v28, %s3978_s2 }
 0x2d5   : > { %1214 = vrot.lane.b32.xlu1 %v4535_v28, %s3980_s25 }
 0x2d9   : > { %1216 = vrot.lane.b32.xlu1 %v4531_v27, %s3980_s25 }
 0x33b   : > { %v1221_v29 = vpop.permute.xlu0 %1220  ;;  %v1017_v30 = vpop.permute.xlu1 %1016 }
 0x33c   : > { %3248 = vmatprep.subr.msk.mxu0 %vm1018_vm2, %v1017_v30  ;;  %3262 = vmatprep.subr.msk.mxu1 %vm1018_vm2, %v1221_v29 }
 0x33d   : > { %3249 = vmatpush3.xpose.msk.msra.mxu0 %vm1018_vm2, %v1017_v30  ;;  %3263 = vmatpush3.xpose.msk.msra.mxu1 %vm1018_vm2, %v1221_v29 }
 0x33f   : > { %v1015_v31 = vpop.permute.xlu1 %1014 }
 0x340   : > { %3250 = vmatprep.subr.msk.mxu0 %vm1018_vm2, %v1015_v31 }
 0x341   : > { %3251 = vmatpush3.xpose.msk.msra.mxu0 %vm1018_vm2, %v1015_v31 }
 0x343   : > { %v1219_v32 = vpop.permute.xlu1 %1218 }
 0x344   : > { %3253 = vmatmul.mubr.msk.f32.vlgmr.msra.gmra.mxu0 %vm1018_vm2, %v4531_v27  ;;  %3264 = vmatprep.subr.msk.mxu1 %vm1018_vm2, %v1219_v32 }
 0x345   : > { %3265 = vmatpush3.xpose.msk.msra.mxu1 %vm1018_vm2, %v1219_v32 }
 0x347   : > { %v1215_v33 = vpop.permute.xlu1 %1214 }
 0x348   : > { %3266 = vmatprep.mubr.msk.f32.mxu1 %vm1018_vm2, %v1215_v33 }
 0x34b   : > { %v1217_v34 = vpop.permute.xlu1 %1216 }
 0x34c   : > { %3267 = vmatmul.mubr.msk.f32.vlgmr.msra.gmra.mxu1 %vm1018_vm2, %v1217_v34 }
 0x404   : > { %v3254_v36 = vpop.f32.mrf.mxu0 }
 0x405   : > { %v1099_v38 = vadd.f32 %v3254_v36, %v4555_v35 }
 0x406   : > { %v1093_v39 = vpop.f32.mrf.mxu0 }
 0x407   : > { %v1094_v40 = vadd.f32 %v1093_v39, %v4557_v37  ;;  %v1106_v41 = vsel %vm1102_vm3, %v1099_v38, -inf }
 0x408   : > { %1107 = vmax.xlane.f32.xlu0 %v1106_v41 }
 0x409   : > { %v1103_v42 = vsel %vm1102_vm3, %v1094_v40, -inf }
 0x40a   : > { %1104 = vmax.xlane.f32.xlu1 %v1103_v42 }
 0x40c   : > { %v3268_v43 = vpop.f32.mrf.mxu1 }
 0x40d   : > { %v1302_v46 = vadd.f32 %v3268_v43, %v4555_v35 }
 0x40e   : > { %v1296_v44 = vpop.f32.mrf.mxu1 }
 0x40f   : > { %v1297_v45 = vadd.f32 %v1296_v44, %v4557_v37  ;;  %v1308_v48 = vsel %vm1102_vm3, %v1302_v46, -inf }
 0x411   : > { %v1305_v47 = vsel %vm1102_vm3, %v1297_v45, -inf }
 0x412   : > { %1306 = vmax.xlane.f32.xlu1 %v1305_v47 }
 0x416   : > { %1309 = vmax.xlane.f32.xlu1 %v1308_v48 }
 0x41e   : > { %1127 = vrot.lane.b32.xlu0 %v4531_v27, %s3981_s9 }
 0x427   : > { %1125 = vrot.lane.b32.xlu1 %v4535_v28, %s3981_s9 }
 0x491   : > { %v1108_v49 = vpop.xlane.xlu0 %1107 }
 0x492   : > { %v1110_v50 = vsub.f32 %v1099_v38, %v1108_v49 }
 0x493   : > { %v1105_v51 = vpop.xlane.xlu1 %1104 }
 0x494   : > { %v1113_v52 = vmul.f32 1.442695, %v1110_v50  ;;  %v1109_v53 = vsub.f32 %v1094_v40, %v1105_v51 }
 0x495   : > { %v1128_v54 = vpop.permute.xlu0 %1127 }
 0x496   : > { %3529 = vpow2.f32 %v1113_v52  ;;  %v1111_v55 = vmul.f32 1.442695, %v1109_v53  ;;  %3255 = vmatprep.subr.mxu0 %v1128_v54 }
 0x497   : > { %3256 = vmatpush3.msra.mxu0 %v1128_v54 }
 0x498   : > { %3531 = vpow2.f32 %v1111_v55 }
 0x49b   : > { %v1307_v56 = vpop.xlane.xlu1 %1306 }
 0x49c   : > { %v1311_v57 = vsub.f32 %v1297_v45, %v1307_v56 }
 0x49e   : > { %v1313_v58 = vmul.f32 1.442695, %v1311_v57 }
 0x49f   : > { %v1310_v59 = vpop.xlane.xlu1 %1309 }
 0x4a0   : > { %3533 = vpow2.f32 %v1313_v58  ;;  %v1312_v60 = vsub.f32 %v1302_v46, %v1310_v59 }
 0x4a2   : > { %v1315_v61 = vmul.f32 1.442695, %v1312_v60 }
 0x4a3   : > { %v3530_v62 = vpop.eup %3529  ;;  %v1126_v63 = vpop.permute.xlu1 %1125 }
 0x4a4   : > { %3535 = vpow2.f32 %v1315_v61  ;;  %3257 = vmatprep.subr.mxu0 %v1126_v63  ;;  %v1118_v0 = vsel %vm1102_vm3, %v3530_v62, 0.0 }
 0x4a5   : > { %v3532_v1 = vpop.eup %3531  ;;  %1119 = vadd.xlane.f32.xlu1 %v1118_v0  ;;  %3258 = vmatpush3.msra.mxu0 %v1126_v63 }
 0x4a6   : > { %v1115_v4 = vsel %vm1102_vm3, %v3532_v1, 0.0 }
 0x4a7   : > { %1116 = vadd.xlane.f32.xlu0 %v1115_v4 }
 0x4ad   : > { %v3534_v5 = vpop.eup %3533 }
 0x4ae   : > { %v1317_v6 = vsel %vm1102_vm3, %v3534_v5, 0.0 }
 0x4af   : > { %1318 = vadd.xlane.f32.xlu0 %v1317_v6 }
 0x4b1   : > { %v3536_v7 = vpop.eup %3535 }
 0x4b2   : > { %v1320_v8 = vsel %vm1102_vm3, %v3536_v7, 0.0 }
 0x4b3   : > { %1321 = vadd.xlane.f32.xlu1 %v1320_v8 }
 0x4c4   : > { %1329 = vrot.lane.b32.xlu1 %v4531_v27, %s3982_s24 }
 0x4c5   : > { %1327 = vrot.lane.b32.xlu0 %v4535_v28, %s3982_s24 }
 0x4c8   : > { %1585 = vrot.lane.b32.xlu1 %v4531_v27, %s3983_s26 }
 0x4c9   : > { %1583 = vrot.lane.b32.xlu0 %v4535_v28, %s3983_s26 }
 0x4cc   : > { %1579 = vrot.lane.b32.xlu1 %v4535_v28, %s3984_s1 }
 0x4cd   : > { %1581 = vrot.lane.b32.xlu0 %v4531_v27, %s3984_s1 }
 0x4d0   : > { %1871 = vrot.lane.b32.xlu1 %v4531_v27, %s3985_s16 }
 0x4d1   : > { %1869 = vrot.lane.b32.xlu0 %v4535_v28, %s3985_s16 }
 0x4d4   : > { %1865 = vrot.lane.b32.xlu1 %v4535_v28, %s3986_s7 }
 0x4d5   : > { %1867 = vrot.lane.b32.xlu0 %v4531_v27, %s3986_s7 }
 0x52e   : > { %v1120_v9 = vpop.xlane.xlu1 %1119 }
 0x52f   : > { %3537 = vrcp.f32 %v1120_v9 }
 0x530   : > { %v1117_v10 = vpop.xlane.xlu0 %1116 }
 0x531   : > { %3539 = vrcp.f32 %v1117_v10 }
 0x538   : > { %v1319_v11 = vpop.xlane.xlu0 %1318 }
 0x539   : > { %3541 = vrcp.f32 %v1319_v11 }
 0x53c   : > { %v1322_v12 = vpop.xlane.xlu1 %1321  ;;  %v3538_v13 = vpop.eup %3537 }
 0x53d   : > { %3543 = vrcp.f32 %v1322_v12  ;;  %v1124_v17 = vmul.f32 %v3538_v13, %v3530_v62  ;;  %v1328_v18 = vpop.permute.xlu0 %1327 }
 0x53e   : > { %v3540_v14 = vpop.eup %3539 }
 0x53f   : > { %v1123_v15 = vmul.f32 %v3540_v14, %v3532_v1 }
 0x540   : > { %v1330_v16 = vpop.permute.xlu1 %1329 }
 0x541   : > { %3259 = vmatprep.mubr.msk.f32.mxu0 %vm1102_vm3, %v1123_v15  ;;  %3269 = vmatprep.subr.mxu0 %v1330_v16  ;;  %v1584_v36 = vpop.permute.xlu0 %1583 }
 0x542   : > { %3260 = vmatmul.mubr.msk.f32.vlgmr.msra.gmra.mxu0 %vm1102_vm3, %v1124_v17 }
 0x543   : > { %3270 = vmatpush3.msra.mxu0 %v1330_v16 }
 0x544   : > { %3271 = vmatprep.subr.mxu0 %v1328_v18  ;;  %v1586_v30 = vpop.permute.xlu1 %1585 }
 0x545   : > { %3272 = vmatpush3.msra.mxu0 %v1328_v18  ;;  %v1582_v39 = vpop.permute.xlu0 %1581 }
 0x546   : > { %v3542_v19 = vpop.eup %3541  ;;  %3276 = vmatprep.subr.mxu0 %v1416_v24 }
 0x547   : > { %v1325_v20 = vmul.f32 %v3542_v19, %v3534_v5 }
 0x548   : > { %v1580_v34 = vpop.permute.xlu1 %1579 }
 0x549   : > { %3273 = vmatprep.mubr.msk.f32.mxu0 %vm1102_vm3, %v1325_v20  ;;  %v1870_v41 = vpop.permute.xlu0 %1869 }
 0x54a   : > { %v3544_v21 = vpop.eup %3543 }
 0x54b   : > { %v1326_v22 = vmul.f32 %v3544_v21, %v3536_v7 }
 0x54c   : > { %v1872_v38 = vpop.permute.xlu1 %1871 }
 0x54d   : > { %3274 = vmatmul.mubr.msk.f32.vlgmr.msra.gmra.mxu0 %vm1102_vm3, %v1326_v22  ;;  %v1868_v42 = vpop.permute.xlu0 %1867 }
 0x54e   : > { %3277 = vmatpush3.msra.mxu0 %v1416_v24 }
 0x54f   : > { %3281 = vmatprep.subr.mxu0 %v1213_v26 }
 0x550   : > { %v1866_v40 = vpop.permute.xlu1 %1865 }
 0x602   : > { %v3261_v29 = vpop.f32.mrf.mxu0 }
 0x604   : > { %v1203_v31 = vpop.f32.mrf.mxu0 }
 0x60d   : > { %v3275_v32 = vpop.f32.mrf.mxu0 }
 0x60f   : > { %v1405_v33 = vpop.f32.mrf.mxu0 }
 0x610   : > { %3278 = vmatprep.mubr.msk.f32.mxu0 %vm1018_vm2, %v1405_v33 }
 0x611   : > { %3279 = vmatmul.mubr.msk.f32.vlgmr.msra.gmra.mxu0 %vm1018_vm2, %v3275_v32 }
 0x612   : > { %3282 = vmatpush3.msra.mxu0 %v1213_v26  ;;  %3283 = vmatprep.mubr.msk.f32.mxu0 %vm1018_vm2, %v1203_v31 }
 0x613   : > { %3286 = vmatprep.subr.msk.mxu0 %vm1018_vm2, %v1586_v30 }
 0x615   : > { %3284 = vmatmul.mubr.msk.f32.vlgmr.msra.gmra.mxu0 %vm1018_vm2, %v3261_v29  ;;  %v1781_v29 = vunpack.c.h.bf16 %v4588_v23 }
 0x616   : > { %3287 = vmatpush3.xpose.msk.msra.mxu0 %vm1018_vm2, %v1586_v30  ;;  %3290 = vmatprep.mubr.msk.f32.mxu0 %vm1018_vm2, %v1580_v34 }
 0x617   : > { %3288 = vmatprep.subr.msk.mxu0 %vm1018_vm2, %v1584_v36 }
 0x61a   : > { %3289 = vmatpush3.xpose.msk.msra.mxu0 %vm1018_vm2, %v1584_v36 }
 0x61b   : > { %3305 = vmatprep.subr.msk.mxu0 %vm1018_vm2, %v1872_v38 }
 0x61d   : > { %3291 = vmatmul.mubr.msk.f32.vlgmr.msra.gmra.mxu0 %vm1018_vm2, %v1582_v39  ;;  %v2067_v39 = vunpack.c.h.bf16 %v4592_v25  ;;  %v3028_v25 = vld [vmem:[%s4811_s18] ss:$0 sm:$0xff] }
 0x61e   : > { %3306 = vmatpush3.xpose.msk.msra.mxu0 %vm1018_vm2, %v1872_v38  ;;  %3309 = vmatprep.mubr.msk.f32.mxu0 %vm1018_vm2, %v1866_v40 }
 0x61f   : > { %3307 = vmatprep.subr.msk.mxu0 %vm1018_vm2, %v1870_v41 }
 0x622   : > { %3308 = vmatpush3.xpose.msk.msra.mxu0 %vm1018_vm2, %v1870_v41 }
 0x625   : > { %3310 = vmatmul.mubr.msk.f32.vlgmr.msra.gmra.mxu0 %vm1018_vm2, %v1868_v42 }
 0x6d1   : > { %v3280_v43 = vpop.f32.mrf.mxu0 }
 0x6d3   : > { %v1489_v44 = vpop.f32.mrf.mxu0 }
 0x6d5   : > { %v3285_v45 = vpop.f32.mrf.mxu0 }
 0x6d6   : > { %v4611_v46 = vadd.f32 %v3285_v45, %v3280_v43 }
 0x6d7   : > { %v1570_v47 = vpop.f32.mrf.mxu0 }
 0x6d8   : > { %v4613_v48 = vadd.f32 %v1570_v47, %v1489_v44 }
 0x6dd   : > { %v3292_v49 = vpop.f32.mrf.mxu0 }
 0x6de   : > { %v1667_v50 = vadd.f32 %v3292_v49, %v4555_v35 }
 0x6df   : > { %v1661_v51 = vpop.f32.mrf.mxu0 }
 0x6e0   : > { %v1662_v52 = vadd.f32 %v1661_v51, %v4557_v37  ;;  %v1673_v53 = vsel %vm1102_vm3, %v1667_v50, -inf }
 0x6e1   : > { %1674 = vmax.xlane.f32.xlu0 %v1673_v53 }
 0x6e2   : > { %v1670_v54 = vsel %vm1102_vm3, %v1662_v52, -inf }
 0x6e3   : > { %1671 = vmax.xlane.f32.xlu1 %v1670_v54 }
 0x6e5   : > { %v3311_v1 = vpop.f32.mrf.mxu0 }
 0x6e6   : > { %v1953_v6 = vadd.f32 %v3311_v1, %v4555_v35 }
 0x6e7   : > { %v1947_v4 = vpop.f32.mrf.mxu0 }
 0x6e8   : > { %v1948_v5 = vadd.f32 %v1947_v4, %v4557_v37  ;;  %v1959_v8 = vsel %vm1102_vm3, %v1953_v6, -inf }
 0x6ea   : > { %v1956_v7 = vsel %vm1102_vm3, %v1948_v5, -inf }
 0x76a   : > { %v1675_v55 = vpop.xlane.xlu0 %1674 }
 0x76b   : > { %v1677_v56 = vsub.f32 %v1667_v50, %v1675_v55 }
 0x76c   : > { %v1672_v57 = vpop.xlane.xlu1 %1671 }
 0x76d   : > { %v1680_v58 = vmul.f32 1.442695, %v1677_v56  ;;  %v1676_v59 = vsub.f32 %v1662_v52, %v1672_v57 }
 0x76f   : > { %3545 = vpow2.f32 %v1680_v58  ;;  %v1678_v60 = vmul.f32 1.442695, %v1676_v59  ;;  %v3058_v58 = vld [vmem:[%s4469_s4] sm:$0xff]  }
 0x771   : > { %3547 = vpow2.f32 %v1678_v60  ;;  %v3060_v60 = vunpack.c.h.bf16 %v3058_v58 }
 0x77c   : > { %v3546_v61 = vpop.eup %3545 }
 0x77d   : > { %v1685_v62 = vsel %vm1102_vm3, %v3546_v61, 0.0 }
 0x77e   : > { %v3548_v63 = vpop.eup %3547  ;;  %1686 = vadd.xlane.f32.xlu1 %v1685_v62  ;;  %v2298_v62 = vld [vmem:[%s4477_s15 + $0x78] sm:$0xff] }
 0x77f   : > { %v1682_v0 = vsel %vm1102_vm3, %v3548_v63, 0.0  ;;  %v2329_v1 = vunpack.c.l.bf16 %v2298_v62  ;;  %v2330_v4 = vunpack.c.h.bf16 %v2298_v62 }
 0x780   : > { %1683 = vadd.xlane.f32.xlu0 %v1682_v0  ;;  %v2296_v0 = vld [vmem:[%s4477_s15 + $0x68] sm:$0xff] }
 0x78f   : > { %1692 = vrot.lane.b32.xlu1 %v4535_v28, %s3987_s3 }
 0x796   : > { %1694 = vrot.lane.b32.xlu0 %v4531_v27, %s3987_s3 }
 0x7b3   : > { %1957 = vmax.xlane.f32.xlu1 %v1956_v7  ;;  %v2295_v7 = vld [vmem:[%s4477_s15 + $0x60] sm:$0xff] }
 0x7b5   : > { %1960 = vmax.xlane.f32.xlu0 %v1959_v8  ;;  %v2326_v8 = vunpack.c.h.bf16 %v2296_v0 }
 0x807   : > { %v1687_v9 = vpop.xlane.xlu1 %1686 }
 0x808   : > { %3549 = vrcp.f32 %v1687_v9  ;;  %v2325_v9 = vunpack.c.l.bf16 %v2296_v0 }
 0x809   : > { %v1684_v10 = vpop.xlane.xlu0 %1683 }
 0x80a   : > { %3551 = vrcp.f32 %v1684_v10  ;;  %v2294_v10 = vld [vmem:[%s4477_s15 + $0x58] sm:$0xff] }
 0x80b   : > { %v1693_v12 = vpop.permute.xlu1 %1692 }
 0x80d   : > { %v1695_v11 = vpop.permute.xlu0 %1694 }
 0x80e   : > { %3293 = vmatprep.subr.mxu1 %v1695_v11 }
 0x80f   : > { %3294 = vmatpush3.msra.mxu1 %v1695_v11  ;;  %v2324_v11 = vunpack.c.h.bf16 %v2295_v7 }
 0x810   : > { %3295 = vmatprep.subr.mxu1 %v1693_v12 }
 0x811   : > { %3296 = vmatpush3.msra.mxu1 %v1693_v12  ;;  %v2323_v12 = vunpack.c.l.bf16 %v2295_v7 }
 0x812   : > { %3300 = vmatprep.subr.mxu1 %v1781_v29 }
 0x815   : > { %v3550_v13 = vpop.eup %3549 }
 0x816   : > { %v1691_v35 = vmul.f32 %v3550_v13, %v3546_v61  ;;  %v3059_v61 = vunpack.c.l.bf16 %v3058_v58  ;;  %v2293_v13 = vld [vmem:[%s4477_s15 + $0x50] sm:$0xff] }
 0x817   : > { %v3552_v37 = vpop.eup %3551 }
 0x818   : > { %v1690_v14 = vmul.f32 %v3552_v37, %v3548_v63  ;;  %v2297_v63 = vld [vmem:[%s4477_s15 + $0x70] sm:$0xff]  ;;  %v2322_v37 = vunpack.c.h.bf16 %v2294_v10 }
 0x81a   : > { %3297 = vmatprep.mubr.msk.f32.mxu1 %vm1102_vm3, %v1690_v14  ;;  %v2321_v14 = vunpack.c.l.bf16 %v2294_v10 }
 0x81b   : > { %3298 = vmatmul.mubr.msk.f32.vlgmr.msra.gmra.mxu1 %vm1102_vm3, %v1691_v35  ;;  %v2292_v35 = vld [vmem:[%s4477_s15 + $0x48] sm:$0xff] }
 0x81c   : > { %3301 = vmatpush3.msra.mxu1 %v1781_v29 }
 0x83c   : > { %v1958_v15 = vpop.xlane.xlu1 %1957 }
 0x83d   : > { %v1962_v16 = vsub.f32 %v1948_v5, %v1958_v15  ;;  %v2328_v5 = vunpack.c.h.bf16 %v2297_v63  ;;  %v2320_v15 = vunpack.c.h.bf16 %v2293_v13 }
 0x83e   : > { %v1961_v17 = vpop.xlane.xlu0 %1960 }
 0x83f   : > { %v1964_v18 = vmul.f32 1.442695, %v1962_v16  ;;  %v1963_v19 = vsub.f32 %v1953_v6, %v1961_v17  ;;  %v2327_v6 = vunpack.c.l.bf16 %v2297_v63  ;;  %v2319_v16 = vunpack.c.l.bf16 %v2293_v13  ;;  %v2291_v17 = vld [vmem:[%s4477_s15 + $0x40] sm:$0xff]  ;;  %v3030_v63 = vld [vmem:[%s4813_s17] ss:$0 sm:$0xff] }
 0x841   : > { %3553 = vpow2.f32 %v1964_v18  ;;  %v1966_v20 = vmul.f32 1.442695, %v1963_v19  ;;  %v2318_v18 = vunpack.c.h.bf16 %v2292_v35  ;;  %v2317_v19 = vunpack.c.l.bf16 %v2292_v35 }
 0x843   : > { %3555 = vpow2.f32 %v1966_v20  ;;  %v2290_v20 = vld [vmem:[%s4477_s15 + $0x38] sm:$0xff] }
 0x844   : > { %v2313_v29 = vunpack.c.l.bf16 %v2290_v20 }
 0x84e   : > { %v3554_v21 = vpop.eup %3553 }
 0x84f   : > { %v1968_v22 = vsel %vm1102_vm3, %v3554_v21, 0.0 }
 0x850   : > { %v3556_v24 = vpop.eup %3555  ;;  %1969 = vadd.xlane.f32.xlu0 %v1968_v22  ;;  %v2315_v22 = vunpack.c.l.bf16 %v2291_v17 }
 0x851   : > { %v1971_v26 = vsel %vm1102_vm3, %v3556_v24, 0.0 }
 0x852   : > { %1972 = vadd.xlane.f32.xlu1 %v1971_v26  ;;  %v2314_v26 = vunpack.c.h.bf16 %v2290_v20 }
 0x863   : > { %1978 = vrot.lane.b32.xlu1 %v4535_v28, %s3988_s29 }
 0x866   : > { %1980 = vrot.lane.b32.xlu0 %v4531_v27, %s3988_s29 }
 0x8d9   : > { %v1970_v30 = vpop.xlane.xlu0 %1969 }
 0x8da   : > { %3557 = vrcp.f32 %v1970_v30  ;;  %v2288_v30 = vld [vmem:[%s4477_s15 + $0x28] sm:$0xff] }
 0x8db   : > { %v3299_v31 = vpop.f32.mrf.mxu1  ;;  %v1973_v32 = vpop.xlane.xlu1 %1972 }
 0x8dc   : > { %3559 = vrcp.f32 %v1973_v32 }
 0x8dd   : > { %v1770_v33 = vpop.f32.mrf.mxu1  ;;  %v1981_v34 = vpop.permute.xlu0 %1980 }
 0x8de   : > { %3302 = vmatprep.mubr.msk.f32.mxu1 %vm1018_vm2, %v1770_v33  ;;  %3312 = vmatprep.subr.mxu1 %v1981_v34  ;;  %v2287_v33 = vld [vmem:[%s4477_s15 + $0x20] sm:$0xff] }
 0x8df   : > { %3303 = vmatmul.mubr.msk.f32.vlgmr.msra.gmra.mxu1 %vm1018_vm2, %v3299_v31  ;;  %v1979_v23 = vpop.permute.xlu1 %1978 }
 0x8e0   : > { %3313 = vmatpush3.msra.mxu1 %v1981_v34  ;;  %v2310_v34 = vunpack.c.h.bf16 %v2288_v30 }
 0x8e1   : > { %3314 = vmatprep.subr.mxu1 %v1979_v23 }
 0x8e2   : > { %3315 = vmatpush3.msra.mxu1 %v1979_v23  ;;  %v2309_v23 = vunpack.c.l.bf16 %v2288_v30 }
 0x8e3   : > { %3319 = vmatprep.subr.mxu1 %v2067_v39 }
 0x8e7   : > { %v3558_v36 = vpop.eup %3557 }
 0x8e8   : > { %v1976_v28 = vmul.f32 %v3558_v36, %v3554_v21  ;;  %v2316_v21 = vunpack.c.h.bf16 %v2291_v17  ;;  %v2286_v36 = vld [vmem:[%s4477_s15 + $0x18] sm:$0xff] }
 0x8e9   : > { %v3560_v38 = vpop.eup %3559 }
 0x8ea   : > { %3316 = vmatprep.mubr.msk.f32.mxu1 %vm1102_vm3, %v1976_v28  ;;  %v1977_v27 = vmul.f32 %v3560_v38, %v3556_v24  ;;  %v2289_v24 = vld [vmem:[%s4477_s15 + $0x30] sm:$0xff]  ;;  %v2308_v28 = vunpack.c.h.bf16 %v2287_v33  ;;  %v2307_v38 = vunpack.c.l.bf16 %v2287_v33 }
 0x8eb   : > { %v2312_v31 = vunpack.c.h.bf16 %v2289_v24  ;;  %v2311_v32 = vunpack.c.l.bf16 %v2289_v24 }
 0x8ec   : > { %3317 = vmatmul.mubr.msk.f32.vlgmr.msra.gmra.mxu1 %vm1102_vm3, %v1977_v27  ;;  %v2285_v27 = vld [vmem:[%s4477_s15 + $0x10] sm:$0xff] }
 0x8ed   : > { %3320 = vmatpush3.msra.mxu1 %v2067_v39  ;;  %v2306_v39 = vunpack.c.h.bf16 %v2286_v36 }
 0x8ee   : > { %2343 = vmatprep.subr.mxu1 %v2330_v4 }
 0x99f   : > { %v3304_v40 = vpop.f32.mrf.mxu1 }
 0x9a0   : > { %v1864_v41 = vadd.f32 %v3304_v40, %v4611_v46  ;;  %v2305_v40 = vunpack.c.l.bf16 %v2286_v36  ;;  %v3142_v36 = vld [vmem:[%s4504_s21 + $0x28] sm:$0xff]  }
 0x9a1   : > { %v1854_v42 = vpop.f32.mrf.mxu1 }
 0x9a2   : > { %v1863_v43 = vadd.f32 %v1854_v42, %v4613_v48  ;;  %v2303_v42 = vunpack.c.l.bf16 %v2285_v27 }
 0x9ac   : > { %v3318_v44 = vpop.f32.mrf.mxu1 }
 0x9ae   : > { %v2056_v45 = vpop.f32.mrf.mxu1 }
 0x9af   : > { %3321 = vmatprep.mubr.msk.f32.mxu1 %vm1018_vm2, %v2056_v45 }
 0x9b0   : > { %3322 = vmatmul.mubr.msk.f32.vlgmr.msra.gmra.mxu1 %vm1018_vm2, %v3318_v44 }
 0x9b1   : > { %2344 = vmatpush1.msra.mxu1 %v2329_v1 }
 0x9b2   : > { %2345 = vmatprep.subr.mxu1 %v2328_v5  ;;  %v3137_v5 = vld [vmem:[%s4499_s22 + $0x38] sm:$0xff]  }
 0x9b3   : > { %2346 = vmatpush1.msra.mxu1 %v2327_v6  ;;  %v3096_v6 = vunpack.c.h.bf16 %v3137_v5  ;;  %v3095_v7 = vunpack.c.l.bf16 %v3137_v5 }
 0x9b4   : > { %2347 = vmatprep.subr.mxu1 %v2326_v8  ;;  %v3136_v8 = vld [vmem:[%s4499_s22 + $0x30] sm:$0xff]  }
 0x9b5   : > { %2348 = vmatpush1.msra.mxu1 %v2325_v9  ;;  %v3092_v9 = vunpack.c.h.bf16 %v3136_v8  ;;  %v3091_v10 = vunpack.c.l.bf16 %v3136_v8 }
 0x9b6   : > { %2349 = vmatprep.subr.mxu1 %v2324_v11  ;;  %v3135_v11 = vld [vmem:[%s4499_s22 + $0x28] sm:$0xff]  }
 0x9b7   : > { %2350 = vmatpush1.msra.mxu1 %v2323_v12  ;;  %v3088_v12 = vunpack.c.h.bf16 %v3135_v11  ;;  %v3087_v13 = vunpack.c.l.bf16 %v3135_v11 }
 0x9b8   : > { %2351 = vmatprep.subr.mxu1 %v2322_v37  ;;  %v3134_v37 = vld [vmem:[%s4499_s22 + $0x20] sm:$0xff]  }
 0x9b9   : > { %2352 = vmatpush1.msra.mxu1 %v2321_v14  ;;  %v3084_v14 = vunpack.c.h.bf16 %v3134_v37  ;;  %v3083_v35 = vunpack.c.l.bf16 %v3134_v37 }
 0x9ba   : > { %2353 = vmatprep.subr.mxu1 %v2320_v15  ;;  %v3133_v15 = vld [vmem:[%s4499_s22 + $0x18] sm:$0xff]  }
 0x9bb   : > { %2354 = vmatpush1.msra.mxu1 %v2319_v16  ;;  %v3080_v16 = vunpack.c.h.bf16 %v3133_v15  ;;  %v3079_v17 = vunpack.c.l.bf16 %v3133_v15 }
 0x9bc   : > { %2355 = vmatprep.subr.mxu1 %v2318_v18  ;;  %v3132_v18 = vld [vmem:[%s4499_s22 + $0x10] sm:$0xff]  }
 0x9bd   : > { %2356 = vmatpush1.msra.mxu1 %v2317_v19  ;;  %v3076_v19 = vunpack.c.h.bf16 %v3132_v18  ;;  %v3075_v20 = vunpack.c.l.bf16 %v3132_v18 }
 0x9be   : > { %2357 = vmatprep.subr.mxu1 %v2316_v21  ;;  %v3131_v21 = vld [vmem:[%s4499_s22 + $0x8] sm:$0xff]  }
 0x9bf   : > { %2358 = vmatpush1.msra.mxu1 %v2315_v22  ;;  %v3072_v22 = vunpack.c.h.bf16 %v3131_v21  ;;  %v3071_v24 = vunpack.c.l.bf16 %v3131_v21  ;;  %v3036_v21 = vld [vmem:[%s772_s20] ss:$0 sm:$0xff] }
 0x9c0   : > { %2359 = vmatprep.subr.mxu1 %v2314_v26  ;;  %v3066_v26 = vld [vmem:[%s4499_s22] sm:$0xff]  }
 0x9c1   : > { %2360 = vmatpush1.msra.mxu1 %v2313_v29  ;;  %v3068_v29 = vunpack.c.h.bf16 %v3066_v26  ;;  %v3067_v30 = vunpack.c.l.bf16 %v3066_v26 }
 0x9c2   : > { %2361 = vmatprep.subr.mxu1 %v2312_v31  ;;  %v3144_v31 = vld [vmem:[%s4504_s21 + $0x38] sm:$0xff]  }
 0x9c3   : > { %2362 = vmatpush1.msra.mxu1 %v2311_v32  ;;  %v3143_v32 = vld [vmem:[%s4504_s21 + $0x30] sm:$0xff]   ;;  %v3128_v33 = vunpack.c.h.bf16 %v3144_v31 }
 0x9c4   : > { %2363 = vmatprep.subr.mxu1 %v2310_v34  ;;  %v3127_v34 = vunpack.c.l.bf16 %v3144_v31 }
 0x9c5   : > { %2364 = vmatpush1.msra.mxu1 %v2309_v23  ;;  %v3124_v23 = vunpack.c.h.bf16 %v3143_v32 }
 0x9c6   : > { %2365 = vmatprep.subr.mxu1 %v2308_v28  ;;  %v3123_v28 = vunpack.c.l.bf16 %v3143_v32 }
 0x9c7   : > { %2366 = vmatpush1.msra.mxu1 %v2307_v38  ;;  %v3120_v38 = vunpack.c.h.bf16 %v3142_v36 }
 0x9c8   : > { %2367 = vmatprep.subr.mxu1 %v2306_v39  ;;  %v3119_v39 = vunpack.c.l.bf16 %v3142_v36 }
 0x9c9   : > { %2368 = vmatpush1.msra.mxu1 %v2305_v40 }
 0xa70   : > { %v3323_v47 = vpop.f32.mrf.mxu1 }
 0xa71   : > { %v2150_v49 = vadd.f32 %v3323_v47, %v1864_v41  ;;  %v2304_v41 = vunpack.c.h.bf16 %v2285_v27  ;;  %v3141_v27 = vld [vmem:[%s4504_s21 + $0x20] sm:$0xff]  }
 0xa72   : > { %v2140_v50 = vpop.f32.mrf.mxu1  ;;  %v3116_v40 = vunpack.c.h.bf16 %v3141_v27 }
 0xa73   : > { %v2152_v51 = vadd.f32 %v2150_v49, %v4517_v3  ;;  %v2149_v52 = vadd.f32 %v2140_v50, %v1863_v43  ;;  %v3130_v3 = vld [vmem:[%s4469_s4 + $0x8] sm:$0xff]   ;;  %2369 = vmatprep.subr.mxu1 %v2304_v41  ;;  %s4812_s4 = scalar_lea.vmem [#allocation8], %s4453_s11 }
 0xa74   : > { %v3063_v59 = vunpack.c.l.bf16 %v3130_v3  ;;  %2370 = vmatpush1.msra.mxu1 %v2303_v42  ;;  %v3140_v41 = vld [vmem:[%s4504_s21 + $0x18] sm:$0xff]   ;;  %v3115_v42 = vunpack.c.l.bf16 %v3141_v27 }
 0xa75   : > { %v4646_v46 = vadd.f32 %v3028_v25, %v2152_v51  ;;  %v2151_v48 = vadd.f32 %v2149_v52, %v4515_v2  ;;  %v3064_v2 = vunpack.c.h.bf16 %v3130_v3 }
 0xa77   : > { %v4649_v53 = vadd.f32 %v3028_v25, %v2151_v48  ;;  %v2164_v54 = vmul.f32 %v4646_v46, %v4646_v46  ;;  %3324 = vmatprep.subr.mxu0 %v3064_v2  ;;  %v3029_v48 = vld [vmem:[%s4812_s4] ss:$0 sm:$0xff] }
 0xa78   : > { %3325 = vmatpush3.msra.mxu0 %v3064_v2  ;;  %v2283_v2 = vld [vmem:[%s4477_s15] sm:$0xff] }
 0xa79   : > { %v2168_v55 = vsel %vm899_vm1, %v2164_v54, 0.0  ;;  %v2163_v56 = vmul.f32 %v4649_v53, %v4649_v53  ;;  %3326 = vmatprep.subr.mxu0 %v3063_v59 }
 0xa7a   : > { %2169 = vadd.xlane.f32.xlu0 %v2168_v55  ;;  %3327 = vmatpush3.msra.mxu0 %v3063_v59  ;;  %v2300_v59 = vunpack.c.h.bf16 %v2283_v2 }
 0xa7b   : > { %v2165_v57 = vsel %vm899_vm1, %v2163_v56, 0.0  ;;  %3328 = vmatprep.subr.mxu0 %v3060_v60 }
 0xa7c   : > { %2166 = vadd.xlane.f32.xlu1 %v2165_v57  ;;  %3329 = vmatpush3.msra.mxu0 %v3060_v60  ;;  %v2284_v57 = vld [vmem:[%s4477_s15 + $0x8] sm:$0xff]  ;;  %v2299_v60 = vunpack.c.l.bf16 %v2283_v2  ;;  %s4814_s15 = scalar_lea.vmem [#allocation18], %s4453_s11 }
 0xa7d   : > { %3330 = vmatprep.subr.mxu0 %v3059_v61  ;;  %v2302_v3 = vunpack.c.h.bf16 %v2284_v57  ;;  %v2301_v58 = vunpack.c.l.bf16 %v2284_v57 }
 0xa7e   : > { %3331 = vmatpush3.msra.mxu0 %v3059_v61  ;;  %v3989_v61 = vmov 0.0  }
 0xa7f   : > { %2371 = vmatprep.subr.mxu1 %v2302_v3  ;;  %2407 = vmatprep.mubr.f32.mxu1 %v3989_v61 }
 0xa80   : > { %2372 = vmatpush1.msra.mxu1 %v2301_v58  ;;  %3335 = vmatprep.subr.mxu0 %v3096_v6 }
 0xa81   : > { %2373 = vmatprep.subr.mxu1 %v2300_v59 }
 0xa82   : > { %2374 = vmatpush1.msra.mxu1 %v2299_v60 }
 0xa83   : > { %3370 = vmatprep.subr.mxu1 %v3128_v33 }
 0xb03   : > { %v2170_v43 = vpop.xlane.xlu0 %2169 }
 0xb04   : > { %v2172_v44 = vmul.f32 0.03125, %v2170_v43  ;;  %v3112_v43 = vunpack.c.h.bf16 %v3140_v41 }
 0xb05   : > { %v2167_v45 = vpop.xlane.xlu1 %2166 }
 0xb06   : > { %v2174_v47 = vadd.f32 1.1920929e-07, %v2172_v44  ;;  %v2171_v49 = vmul.f32 0.03125, %v2167_v45  ;;  %v3139_v44 = vld [vmem:[%s4504_s21 + $0x10] sm:$0xff]   ;;  %v3111_v45 = vunpack.c.l.bf16 %v3140_v41 }
 0xb08   : > { %3561 = vrsqrt.f32 %v2174_v47  ;;  %v2173_v25 = vadd.f32 1.1920929e-07, %v2171_v49  ;;  %v3108_v47 = vunpack.c.h.bf16 %v3139_v44  ;;  %v3138_v49 = vld [vmem:[%s4504_s21 + $0x8] sm:$0xff]  }
 0xb09   : > { %v3103_v37 = vunpack.c.l.bf16 %v3138_v49 }
 0xb0a   : > { %3563 = vrsqrt.f32 %v2173_v25  ;;  %v3107_v25 = vunpack.c.l.bf16 %v3139_v44 }
 0xb15   : > { %v3562_v50 = vpop.eup %3561 }
 0xb16   : > { %v2178_v52 = vmul.f32 %v3562_v50, %v4646_v46  ;;  %v3104_v50 = vunpack.c.h.bf16 %v3138_v49 }
 0xb17   : > { %v3564_v51 = vpop.eup %3563 }
 0xb18   : > { %v2177_v54 = vmul.f32 %v3564_v51, %v4649_v53  ;;  %v2186_v56 = vmul.f32 %v3029_v48, %v2178_v52  ;;  %v2333_v51 = vlaneseq }
 0xb1a   : > { %v2185_v55 = vmul.f32 %v3029_v48, %v2177_v54  ;;  %v2334_v52 = vshrl.u32 %v2333_v51, 7  ;;  %v2331_v54 = vld [vmem:[%s4484_s30] sm:$0x3] }
 0xb1c   : > { %3332 = vmatprep.mubr.msk.f32.mxu0 %vm899_vm1, %v2185_v55  ;;  %v2335_v48 = vsub.s32 0, %v2334_v52 }
 0xb1d   : > { %3333 = vmatmul.mubr.msk.f32.vlgmr.msra.gmra.mxu0 %vm899_vm1, %v2186_v56 }
 0xb1e   : > { %3336 = vmatpush3.msra.mxu0 %v3096_v6  ;;  %v2336_v55 = vrot.slane %v2331_v54, %v2335_v48 }
 0xb1f   : > { %3337 = vmatprep.subr.mxu0 %v3095_v7 }
 0xb20   : > { %3338 = vmatpush3.msra.mxu0 %v3095_v7 }
 0xb21   : > { %3339 = vmatprep.subr.mxu0 %v3092_v9 }
 0xb22   : > { %3340 = vmatpush3.msra.mxu0 %v3092_v9 }
 0xb23   : > { %3341 = vmatprep.subr.mxu0 %v3091_v10 }
 0xb24   : > { %3342 = vmatpush3.msra.mxu0 %v3091_v10 }
 0xb25   : > { %3343 = vmatprep.subr.mxu0 %v3088_v12 }
 0xb26   : > { %3344 = vmatpush3.msra.mxu0 %v3088_v12 }
 0xb27   : > { %3345 = vmatprep.subr.mxu0 %v3087_v13 }
 0xb28   : > { %3346 = vmatpush3.msra.mxu0 %v3087_v13 }
 0xb29   : > { %3347 = vmatprep.subr.mxu0 %v3084_v14 }
 0xb2a   : > { %3348 = vmatpush3.msra.mxu0 %v3084_v14  ;;  %v3098_v14 = vld [vmem:[%s4504_s21] sm:$0xff]  }
 0xb2b   : > { %3349 = vmatprep.subr.mxu0 %v3083_v35  ;;  %v3099_v15 = vunpack.c.l.bf16 %v3098_v14 }
 0xb2c   : > { %3350 = vmatpush3.msra.mxu0 %v3083_v35  ;;  %v3100_v35 = vunpack.c.h.bf16 %v3098_v14 }
 0xb2d   : > { %3351 = vmatprep.subr.mxu0 %v3080_v16 }
 0xb2e   : > { %3352 = vmatpush3.msra.mxu0 %v3080_v16 }
 0xb2f   : > { %3353 = vmatprep.subr.mxu0 %v3079_v17 }
 0xb30   : > { %3354 = vmatpush3.msra.mxu0 %v3079_v17  ;;  %v3035_v17 = vld [vmem:[%s4814_s15] ss:$0 sm:$0xff] }
 0xb31   : > { %3355 = vmatprep.subr.mxu0 %v3076_v19 }
 0xb32   : > { %3356 = vmatpush3.msra.mxu0 %v3076_v19 }
 0xb33   : > { %3357 = vmatprep.subr.mxu0 %v3075_v20 }
 0xb34   : > { %3358 = vmatpush3.msra.mxu0 %v3075_v20 }
 0xb35   : > { %3359 = vmatprep.subr.mxu0 %v3072_v22 }
 0xb36   : > { %3360 = vmatpush3.msra.mxu0 %v3072_v22 }
 0xb37   : > { %3361 = vmatprep.subr.mxu0 %v3071_v24 }
 0xb38   : > { %3362 = vmatpush3.msra.mxu0 %v3071_v24 }
 0xb39   : > { %3363 = vmatprep.subr.mxu0 %v3068_v29 }
 0xb3a   : > { %3364 = vmatpush3.msra.mxu0 %v3068_v29 }
 0xb3b   : > { %3365 = vmatprep.subr.mxu0 %v3067_v30 }
 0xb3c   : > { %3366 = vmatpush3.msra.mxu0 %v3067_v30 }
 0xbdd   : > { %v3334_v62 = vpop.f32.mrf.mxu0 }
 0xbde   : > { %v2280_v4 = vadd.f32 %v3334_v62, %v3030_v63 }
 0xbdf   : > { %v2274_v0 = vpop.f32.mrf.mxu0 }
 0xbe0   : > { %v2275_v1 = vadd.f32 %v3030_v63, %v2274_v0 }
 0xbe2   : > { %2408 = vmatmul.mubr.f32.vlgmr.msra.gmra.mxu1 %v2275_v1  ;;  %v2339_v1 = vsub.s32 1, %v2334_v52 }
 0xbe3   : > { %2413 = vmatprep.mubr.f32.mxu1 %v3989_v61  ;;  %3371 = vmatpush3.msra.mxu1 %v3128_v33 }
 0xbe4   : > { %3372 = vmatprep.subr.mxu1 %v3127_v34 }
 0xbe5   : > { %3373 = vmatpush3.msra.mxu1 %v3127_v34 }
 0xbe6   : > { %2414 = vmatmul.mubr.f32.gmra.mxu1 %v2280_v4  ;;  %3374 = vmatprep.subr.mxu1 %v3124_v23  ;;  %v2340_v4 = vrot.slane %v2331_v54, %v2339_v1 }
 0xbe7   : > { %3375 = vmatpush3.msra.mxu1 %v3124_v23 }
 0xbe8   : > { %3376 = vmatprep.subr.mxu1 %v3123_v28 }
 0xbe9   : > { %3377 = vmatpush3.msra.mxu1 %v3123_v28 }
 0xbea   : > { %3378 = vmatprep.subr.mxu1 %v3120_v38 }
 0xbeb   : > { %3379 = vmatpush3.msra.mxu1 %v3120_v38 }
 0xbec   : > { %3380 = vmatprep.subr.mxu1 %v3119_v39 }
 0xbed   : > { %3381 = vmatpush3.msra.mxu1 %v3119_v39 }
 0xbee   : > { %3382 = vmatprep.subr.mxu1 %v3116_v40 }
 0xbef   : > { %3383 = vmatpush3.msra.mxu1 %v3116_v40 }
 0xbf0   : > { %3384 = vmatprep.subr.mxu1 %v3115_v42 }
 0xbf1   : > { %3385 = vmatpush3.msra.mxu1 %v3115_v42 }
 0xbf2   : > { %3386 = vmatprep.subr.mxu1 %v3112_v43 }
 0xbf3   : > { %3387 = vmatpush3.msra.mxu1 %v3112_v43 }
 0xbf4   : > { %3388 = vmatprep.subr.mxu1 %v3111_v45 }
 0xbf5   : > { %3389 = vmatpush3.msra.mxu1 %v3111_v45 }
 0xbf6   : > { %3390 = vmatprep.subr.mxu1 %v3108_v47 }
 0xbf7   : > { %3391 = vmatpush3.msra.mxu1 %v3108_v47 }
 0xbf8   : > { %3392 = vmatprep.subr.mxu1 %v3107_v25 }
 0xbf9   : > { %3393 = vmatpush3.msra.mxu1 %v3107_v25 }
 0xbfa   : > { %3394 = vmatprep.subr.mxu1 %v3104_v50 }
 0xbfb   : > { %3395 = vmatpush3.msra.mxu1 %v3104_v50 }
 0xbfc   : > { %3396 = vmatprep.subr.mxu1 %v3103_v37 }
 0xbfd   : > { %3397 = vmatpush3.msra.mxu1 %v3103_v37 }
 0xbfe   : > { %3398 = vmatprep.subr.mxu1 %v3100_v35 }
 0xbff   : > { %3399 = vmatpush3.msra.mxu1 %v3100_v35 }
 0xc00   : > { %3400 = vmatprep.subr.mxu1 %v3099_v15 }
 0xc01   : > { %3401 = vmatpush3.msra.mxu1 %v3099_v15 }
 0xca2   : > { %v2409_v56 = vpop.f32.mrf.mxu1 }
 0xca3   : > { %v2410_v57 = vadd.f32 %v2409_v56, %v2336_v55 }
 0xca4   : > { %v2411_v3 = vpop.f32.mrf.mxu1 }
 0xca5   : > { %v3033_v58 = vmul.f32 -1.442695, %v2410_v57  ;;  %v2412_v7 = vadd.f32 %v2411_v3, %v2340_v4 }
 0xca6   : > { %v2415_v2 = vpop.f32.mrf.mxu1 }
 0xca7   : > { %3565 = vpow2.f32 %v3033_v58  ;;  %v2416_v59 = vadd.f32 %v2415_v2, %v2336_v55 }
 0xca8   : > { %v2417_v8 = vpop.f32.mrf.mxu1 }
 0xca9   : > { %v3034_v60 = vmul.f32 -1.442695, %v2416_v59  ;;  %v2418_v12 = vadd.f32 %v2417_v8, %v2340_v4 }
 0xcab   : > { %3567 = vpow2.f32 %v3034_v60 }
 0xcb4   : > { %v3566_v61 = vpop.eup %3565 }
 0xcb5   : > { %v2426_v62 = vadd.f32 1.0, %v3566_v61 }
 0xcb7   : > { %3569 = vrcp.f32 %v2426_v62 }
 0xcb8   : > { %v3568_v63 = vpop.eup %3567 }
 0xcb9   : > { %v2427_v0 = vadd.f32 1.0, %v3568_v63 }
 0xcbb   : > { %3571 = vrcp.f32 %v2427_v0 }
 0xcc4   : > { %v3570_v5 = vpop.eup %3569 }
 0xcc5   : > { %v2432_v6 = vmul.f32 %v3570_v5, %v2410_v57 }
 0xcc7   : > { %v2434_v9 = vmul.f32 %v2432_v6, %v2412_v7 }
 0xcc8   : > { %v3572_v10 = vpop.eup %3571 }
 0xcc9   : > { %v2433_v11 = vmul.f32 %v3572_v10, %v2416_v59  ;;  %3367 = vmatprep.mubr.f32.mxu0 %v2434_v9 }
 0xccb   : > { %v2435_v13 = vmul.f32 %v2433_v11, %v2418_v12 }
 0xccd   : > { %3368 = vmatmul.mubr.f32.vlgmr.msra.gmra.mxu0 %v2435_v13 }
 0xd8d   : > { %v3369_v16 = vpop.f32.mrf.mxu0 }
 0xd8e   : > { %v2547_v20 = vadd.f32 %v3369_v16, %v3035_v17 }
 0xd8f   : > { %v2541_v18 = vpop.f32.mrf.mxu0 }
 0xd90   : > { %v2542_v19 = vadd.f32 %v3035_v17, %v2541_v18 }
 0xd92   : > { %3402 = vmatprep.mubr.f32.mxu1 %v2542_v19 }
 0xd93   : > { %3403 = vmatmul.mubr.f32.vlgmr.msra.gmra.mxu1 %v2547_v20 }
 0xe53   : > { %v3404_v22 = vpop.f32.mrf.mxu1 }
 0xe54   : > { %v2661_v24 = vadd.f32 %v3404_v22, %v3036_v21 }
 0xe55   : > { %v2655_v26 = vpop.f32.mrf.mxu1 }
 0xe56   : > { %v2665_v29 = vadd.f32 %v2661_v24, %v4646_v46  ;;  %v2656_v30 = vadd.f32 %v3036_v21, %v2655_v26  ;;  %2671 = sbr.rel (%p3037_p12) target bundleno = 3676 (0xe5c), region = 132 }
 0xe58   : > { %2667 = vst.msk [vmem:[#allocation2 + $0x8] sm:$0xff] %vm899_vm1, %v2665_v29  ;;  %v2664_v31 = vadd.f32 %v2656_v30, %v4649_v53 }
 0xe5a   : > { %2666 = vst.msk [vmem:[#allocation2] sm:$0xff] %vm899_vm1, %v2664_v31 }
 0xe5b   : > { %2672 = vst.msk [vmem:[#allocation21] sm:$0xff] %vm899_vm1, %v2664_v31  ;;  %2673 = vst.msk [vmem:[#allocation21 + $0x8] sm:$0xff] %vm899_vm1, %v2665_v29 }
 0xe5c PF: > { %p3471_p0 = scmp.eq.s32.totalorder %s4295_s5, 5  ;;  %s3990_s11 = smov [#allocation21]  }
 0xe5d   : > { %s2680_s20 = sshll.u32 %s3990_s11, 4  ;;  %s2681_s20 = int_to_ptr.vmem [resolvable:$true] %s2680_s20 }
 0xe5e   : > { %s3879_s30 = scalar_lea.vmem %s2681_s20, 256  ;;  %p3886_p2 = scmp.lt.s32.totalorder %s2681_s20, %s2681_s20 }
 0xe5f   : > { %p3880_p1 = scmp.ne.s32.totalorder %s2681_s20, %s3879_s30  ;;  %p3887_p3 = scmp.lt.s32.totalorder %s3879_s30, %s3879_s30 }
 0xe61   : > { %p3881_p4 = pnand %p3880_p1, %p3471_p0  ;;  %p3888_p6 = por %p3887_p3, %p3886_p2 }
 0xe63   : > { %p3882_p10 = pneg %p3881_p4 }
 0xe65   : > { %p3889_p8 = pnand %p3888_p6, %p3882_p10 }
 0xe67   : > { %3892 = shalt.err (!%p3889_p8)
}
 0xe68   : > { %s3991_s22 = smov 128   ;;  %s3992_s21 = smov 8  }
 0xe69   : > { %s4815_s0 = sld [smem:[#allocation42_spill]] }
 0xe6f   : > { %3430 = dma.vmem_to_hbm [thread:$0]  (%p3471_p0), %s2681_s20, 256, %s4815_s0, [#allocation5], %s3991_s22, %s3991_s22, %s3992_s21  }
 0xe70   : > { %3944 = dma.done.wait (%p3471_p0), [#allocation5], 256  }
 0xe71   : > { %3946 = vsyncadd (%p3471_p0), [#allocation5], 4294967040 }
 0xe72 PF: > { %s4816_s21 = sld [smem:[#allocation30_spill]]  ;;  %s4819_s18 = smov %s3953_s19 }
 0xe73   : > { %s4817_s2 = sld [smem:[#allocation29_spill]] }
 0xe74   : > { %s4818_s20 = sld [smem:[#allocation31_spill]] }
 0xe78   : > { %p39_p7 = scmp.ge.s32.totalorder %s4816_s21, 8  }
 0xe79   : > { %s4820_s19 = smov %s4817_s2 }
 0xe7a   :  { %41 = sbr.rel (!%p39_p7) target bundleno = 25 (0x19), region = 249 }
 0xe7f   :  { %2696 = vsyncpa [#allocation4], 1 }
 0xe80   :  { %2698 = vsyncpa [#allocation4 + $0x1], 1 }
 0xe81   :  { %2699 = vsyncpa [#allocation7], 1 }
 0xe82   :  { %2701 = vsyncpa [#allocation7 + $0x1], 1 }
 0xe83   :  { %2702 = vsyncpa [#allocation10], 1 }
 0xe84   :  { %2704 = vsyncpa [#allocation10 + $0x1], 1 }
 0xe85   :  { %2705 = vsyncpa [#allocation13], 1 }
 0xe86   :  { %2707 = vsyncpa [#allocation13 + $0x1], 1 }
 0xe87   :  { %2708 = vsyncpa [#allocation16], 1 }
 0xe88   :  { %2710 = vsyncpa [#allocation16 + $0x1], 1 }
 0xe89   :  { %2711 = vsyncpa [#allocation19], 1 }
 0xe8a   :  { %2713 = vsyncpa [#allocation19 + $0x1], 1 }
 0xe8b   :  { %2714 = vsyncpa [#allocation5], 1 }
 0xe8c   :  { %2716 = vsyncpa [#allocation5 + $0x1], 1 }

</bundles_post_ra>
